<compile_context>
chip_gen: v7x
topology: tpu7x:2x2x1
jax: 0.10.0
libtpu: 0.0.40
codegen_flags: <defaults>
</compile_context>

<pallas_src>
import functools

import numpy as np
import jax
import jax.numpy as jnp
from jax.experimental import pallas as pl
from jax.experimental.pallas import tpu as pltpu

GRIDS = (6, 3, 2, 1)


def _round_up(v, m):
    return (v + m - 1) // m * m


def _pick_tile_s(s_pad):
    """Largest pixel tile (multiple of 128) dividing the padded pixel count."""
    for t in (2048, 1024, 512, 256, 128):
        if s_pad % t == 0:
            return t
    return s_pad  # unreachable when s_pad is a multiple of 128


# ---------------------------------------------------------------------------
# Fused kernel.  grid = (N images, 2 phases, T pixel tiles)
#   phase 0: reduce conv + BN + ReLU -> y (VMEM resident), pooled accumulation,
#            last tile: SPP conv + BN + ReLU per scale and W1_i @ sp_i.
#   phase 1: nearest upsample + spatial attention + weighted fusion -> out.
# ---------------------------------------------------------------------------
def sce_kernel(x_ref, idx_ref, w_red_ref, s_red_ref, b_red_ref, inv_cnt_ref,
               w_spp_ref, s_spp_ref, b_spp_ref, w_att1_ref, s_att1_ref,
               b_att1_ref, w_att2_ref, o_ref,
               y_scr, sp_scr, wsp_scr, oh_scr, *, segs):
    phase = pl.program_id(1)
    t = pl.program_id(2)
    nt = pl.num_programs(2)

    # 0/1 cell-membership block (R_pad, tile_s) built in VMEM from the compact
    # per-pixel cell indices (replaces the dense S x R pooling / upsample
    # matrices that were streamed from HBM every tile).  Padded pixels carry
    # index -1 and match no row.  Segment offsets/sizes are multiples of 8 so
    # every sublane slice below is an aligned free view.
    idx = idx_ref[...]                                   # (n_scales, tile_s) int32
    for i, (off, rp, _) in enumerate(segs):
        rows = jax.lax.broadcasted_iota(jnp.int32, (rp, idx.shape[1]), 0)
        oh_scr[off:off + rp, :] = (rows == idx[i:i + 1, :]).astype(jnp.float32)

    # ----- phase 0: reduce conv + BN + ReLU, pooled accumulation, SPP -------
    @pl.when(phase == 0)
    def _phase0():
        y = jnp.dot(w_red_ref[...], x_ref[0], preferred_element_type=jnp.float32)
        y = jnp.maximum(y * s_red_ref[...] + b_red_ref[...], 0.0)
        y_scr[t] = y                                     # resident: no HBM round trip

        # Partial adaptive-average-pool sums for all scales at once: y @ onehot^T.
        part = jax.lax.dot_general(y, oh_scr[...], (((1,), (1,)), ((), ())),
                                   preferred_element_type=jnp.float32)

        @pl.when(t == 0)
        def _():
            sp_scr[...] = jnp.zeros_like(sp_scr)

        for i, (off, rp, _) in enumerate(segs):
            sp_scr[i, :, 0:rp] = sp_scr[i, :, 0:rp] + part[:, off:off + rp]

        # Last pixel tile: finish the mean (1/cnt), per-scale SPP conv+BN+ReLU
        # (direct per-segment stores, no concatenate), and pre-multiply with the
        # attention conv's per-scale slice: wsp_i = W1_i @ sp_i.
        @pl.when(t == nt - 1)
        def _():
            for i, (off, rp, _) in enumerate(segs):
                cell = sp_scr[i, :, 0:rp] * inv_cnt_ref[i, :, 0:rp]
                si = jnp.dot(w_spp_ref[i], cell, preferred_element_type=jnp.float32)
                si = jnp.maximum(si * s_spp_ref[i] + b_spp_ref[i], 0.0)
                sp_scr[i, :, 0:rp] = si
                wsp_scr[i, :, 0:rp] = jnp.dot(w_att1_ref[i], si,
                                              preferred_element_type=jnp.float32)

    # ----- phase 1: nearest upsample + spatial attention + fusion -----------
    @pl.when(phase == 1)
    def _phase1():
        # W1 @ concat_i(ctx_i) == sum_i (W1_i @ sp_i) @ onehot_i : the 4*Cout
        # concatenated context stack is never materialised.
        pre_h = jnp.zeros((wsp_scr.shape[1], oh_scr.shape[1]), jnp.float32)
        for i, (off, rp, _) in enumerate(segs):
            pre_h = pre_h + jnp.dot(wsp_scr[i, :, 0:rp], oh_scr[off:off + rp, :],
                                    preferred_element_type=jnp.float32)
        h = jnp.maximum(pre_h * s_att1_ref[...] + b_att1_ref[...], 0.0)
        att = jax.nn.sigmoid(jnp.dot(w_att2_ref[...], h,
                                     preferred_element_type=jnp.float32)) + 1.0

        # out = y + sum_i ctx_i * att_i, with only ONE upsampled context live
        # at a time (keeps register pressure well under the 64-vreg file).
        out = y_scr[t]
        for i, (off, rp, _) in enumerate(segs):
            ctx = jnp.dot(sp_scr[i, :, 0:rp], oh_scr[off:off + rp, :],
                          preferred_element_type=jnp.float32)
            out = out + ctx * att[i:i + 1, :]
        o_ref[0] = out


# ---------------------------------------------------------------------------
# Host-side metadata: per-pixel cell indices, 1/count vectors, 8-padded segs.
# ---------------------------------------------------------------------------
def build_pool_metadata(H, W, grids):
    ar = W / H
    shapes = []
    for g in grids:
        gh, gw = g, max(1, round(ar * g))
        # TODO(synk): non-divisible sizes make adaptive_avg_pool2d cells overlap;
        # that general case needs the dense pooling-matrix path, not 1 index/pixel.
        assert H % gh == 0 and W % gw == 0, "H, W must be divisible by the grid sizes"
        shapes.append((gh, gw))
    rseg = max(_round_up(gh * gw, 8) for gh, gw in shapes)
    n_sc = len(grids)
    inv = np.zeros((n_sc, 1, rseg), np.float32)
    idx_rows, segs, off = [], [], 0
    for i, (gh, gw) in enumerate(shapes):
        kh, kw = H // gh, W // gw
        hmap = (np.arange(H) // kh).astype(np.int32)
        wmap = (np.arange(W) // kw).astype(np.int32)
        idx_rows.append((hmap[:, None] * gw + wmap[None, :]).reshape(-1))
        r = gh * gw
        rp = _round_up(r, 8)
        segs.append((off, rp, r))
        off += rp
        inv[i, 0, :r] = 1.0 / (kh * kw)
    cell_idx = np.stack(idx_rows, axis=0).astype(np.int32)   # (n_sc, S) local indices
    return cell_idx, inv, tuple(segs), off, rseg


# ---------------------------------------------------------------------------
# Full SCE forward: one fused pallas_call, NCHW in / NCHW out, no transposes.
# ---------------------------------------------------------------------------
def sce_forward(x_nchw, params, grids=GRIDS):
    N, Cin, H, W = x_nchw.shape
    Cout = params['w_red'].shape[0]
    n_sc = len(grids)
    S = H * W
    cell_idx_np, inv_np, segs, R_pad, rseg = build_pool_metadata(H, W, grids)

    S_pad = _round_up(S, 128)            # lane-dense tiles even for odd resolutions
    tile_s = _pick_tile_s(S_pad)
    T = S_pad // tile_s

    x2 = x_nchw.reshape(N, Cin, S).astype(jnp.float32)
    if S_pad != S:
        x2 = jnp.pad(x2, ((0, 0), (0, 0), (0, S_pad - S)))
        cell_idx_np = np.pad(cell_idx_np, ((0, 0), (0, S_pad - S)),
                             constant_values=-1)            # padded pixels hit no cell
    cell_idx = jnp.asarray(cell_idx_np)
    inv_cnt = jnp.asarray(inv_np)
    # Per-scale slices of the attention 1x1 conv: w_att1_r[i] = W1[:, i*C:(i+1)*C].
    w_att1_r = jnp.transpose(params['w_att1'].reshape(Cout, n_sc, Cout), (1, 0, 2))

    # VMEM budget for the fused, y-resident path (v7x only has 64 MiB / core).
    vmem_need = 4 * (T * Cout * tile_s + R_pad * tile_s + 2 * n_sc * Cout * rseg
                     + 2 * (Cin + Cout + n_sc) * tile_s) + (2 << 20)
    if vmem_need > (48 << 20):
        # TODO(synk): unfused two-kernel fallback (y via HBM) for very large images.
        raise ValueError("image too large for the fused VMEM-resident-y SCE kernel")
    vmem_limit = int(min(60 << 20, max(16 << 20, 2 * vmem_need)))

    const = lambda shape: pl.BlockSpec(shape, lambda n, q, t: (0,) * len(shape))

    out = pl.pallas_call(
        functools.partial(sce_kernel, segs=segs),
        out_shape=jax.ShapeDtypeStruct((N, Cout, S_pad), jnp.float32),
        grid=(N, 2, T),
        in_specs=[
            # x is only consumed in phase 0; park the block index during phase 1.
            pl.BlockSpec((1, Cin, tile_s), lambda n, q, t: (n, 0, t * (1 - q))),
            pl.BlockSpec((n_sc, tile_s), lambda n, q, t: (0, t)),
            const((Cout, Cin)),
            const((Cout, 1)), const((Cout, 1)),
            const((n_sc, 1, rseg)),
            const((n_sc, Cout, Cout)),
            const((n_sc, Cout, 1)), const((n_sc, Cout, 1)),
            const((n_sc, Cout, Cout)),
            const((Cout, 1)), const((Cout, 1)),
            const((n_sc, Cout)),
        ],
        # out is only written in phase 1; keep the block index frozen in phase 0.
        out_specs=pl.BlockSpec((1, Cout, tile_s), lambda n, q, t: (n, 0, t * q)),
        scratch_shapes=[
            pltpu.VMEM((T, Cout, tile_s), jnp.float32),    # resident y (per image)
            pltpu.VMEM((n_sc, Cout, rseg), jnp.float32),   # pooled sums -> SPP outputs
            pltpu.VMEM((n_sc, Cout, rseg), jnp.float32),   # W1_i @ sp_i
            pltpu.VMEM((R_pad, tile_s), jnp.float32),      # 0/1 cell-membership block
        ],
        compiler_params=pltpu.CompilerParams(
            dimension_semantics=("parallel", "arbitrary", "arbitrary"),
            vmem_limit_bytes=vmem_limit),
    )(x2, cell_idx, params['w_red'],
      params['s_red'].reshape(-1, 1), params['b_red'].reshape(-1, 1),
      inv_cnt, params['w_spp'],
      params['s_spp'].reshape(n_sc, -1, 1), params['b_spp'].reshape(n_sc, -1, 1),
      w_att1_r, params['s_att1'].reshape(-1, 1), params['b_att1'].reshape(-1, 1),
      params['w_att2'])

    return out[:, :, :S].reshape(N, Cout, H, W)


# ---------------------------------------------------------------------------
# Parameters (deterministic, synthetic).  Conv weights kept in PyTorch's
# (Cout, Cin) layout — no transposes needed for the channels-first kernel.
# ---------------------------------------------------------------------------
def xavier(key, shape):
    fan_out, fan_in = shape
    std = float(np.sqrt(2.0 / (fan_in + fan_out)))
    return (std * jax.random.normal(key, shape)).astype(jnp.float32)


def bn_fused(key, c):
    k1, k2, k3, k4 = jax.random.split(key, 4)
    gamma = jax.random.uniform(k1, (c,), minval=0.5, maxval=1.5)
    beta = 0.1 * jax.random.normal(k2, (c,))
    mean = 0.1 * jax.random.normal(k3, (c,))
    var = jax.random.uniform(k4, (c,), minval=0.5, maxval=1.5)
    scale = gamma * jax.lax.rsqrt(var + 1e-5)
    shift = beta - mean * scale
    return scale.astype(jnp.float32), shift.astype(jnp.float32)


def make_params(key, cin, cout):
    keys = jax.random.split(key, 16)
    p = {}
    p['w_red'] = xavier(keys[0], (cout, cin))
    p['s_red'], p['b_red'] = bn_fused(keys[1], cout)
    w_spp, s_spp, b_spp = [], [], []
    for i in range(4):
        w_spp.append(xavier(keys[2 + 2 * i], (cout, cout)))
        s, b = bn_fused(keys[3 + 2 * i], cout)
        s_spp.append(s)
        b_spp.append(b)
    p['w_spp'] = jnp.stack(w_spp)          # (4, Cout, Cout)
    p['s_spp'] = jnp.stack(s_spp)          # (4, Cout)
    p['b_spp'] = jnp.stack(b_spp)          # (4, Cout)
    p['w_att1'] = xavier(keys[10], (cout, 4 * cout))
    p['s_att1'], p['b_att1'] = bn_fused(keys[11], cout)
    # NOTE: the original module zero-inits this weight (=> att == 1.5 everywhere);
    # use small random values here so the full attention path is exercised.
    p['w_att2'] = 0.1 * xavier(keys[12], (4, cout))
    return p


# ---------------------------------------------------------------------------
# Pure-JAX reference (independent pooling/upsampling via reshape / repeat).
# ---------------------------------------------------------------------------
def sce_reference(x_nchw, p, grids=GRIDS):
    N, Cin, H, W = x_nchw.shape
    x = x_nchw.astype(jnp.float32)
    ar = W / H

    def cbr(t, w, scale, shift):
        y = jnp.einsum('nchw,dc->ndhw', t, w)
        return jnp.maximum(y * scale[None, :, None, None]
                           + shift[None, :, None, None], 0.0)

    y = cbr(x, p['w_red'], p['s_red'], p['b_red'])
    ctx = []
    for i, g in enumerate(grids):
        gh, gw = g, max(1, round(ar * g))
        kh, kw = H // gh, W // gw
        pooled = y.reshape(N, -1, gh, kh, gw, kw).mean(axis=(3, 5))
        sp = cbr(pooled, p['w_spp'][i], p['s_spp'][i], p['b_spp'][i])
        up = jnp.repeat(jnp.repeat(sp, kh, axis=2), kw, axis=3)
        ctx.append(up)
    cat = jnp.concatenate(ctx, axis=1)
    h = jnp.maximum(jnp.einsum('nchw,dc->ndhw', cat, p['w_att1'])
                    * p['s_att1'][None, :, None, None]
                    + p['b_att1'][None, :, None, None], 0.0)
    att = jax.nn.sigmoid(jnp.einsum('nchw,dc->ndhw', h, p['w_att2'])) + 1.0
    out = y
    for i in range(4):
        out = out + ctx[i] * att[:, i:i + 1]
    return out


if __name__ == "__main__":
    key = jax.random.PRNGKey(0)
    k_param, k_x = jax.random.split(key)

    N, Cin, Cout, H, W = 2, 32, 16, 24, 24   # H, W divisible by every grid size
    params = make_params(k_param, Cin, Cout)
    x = jax.random.normal(k_x, (N, Cin, H, W), dtype=jnp.float32)

    out = jax.block_until_ready(sce_forward(x, params))
    ref = jax.block_until_ready(sce_reference(x, params))

    assert out.shape == (N, Cout, H, W)
    np.testing.assert_allclose(np.asarray(out), np.asarray(ref),
                               atol=1e-4, rtol=1e-4)
    print("KERNEL_OK")
</pallas_src>

<mosaic_0001>
module attributes {stable_mosaic.version = 11 : i64} {
  func.func @sce_kernel(%arg0: i32, %arg1: i32, %arg2: i32, %arg3: memref<1x32x128xf32, #tpu.memory_space<vmem>>, %arg4: memref<4x128xi32, #tpu.memory_space<vmem>>, %arg5: memref<16x32xf32, #tpu.memory_space<vmem>>, %arg6: memref<16x1xf32, #tpu.memory_space<vmem>>, %arg7: memref<16x1xf32, #tpu.memory_space<vmem>>, %arg8: memref<4x1x40xf32, #tpu.memory_space<vmem>>, %arg9: memref<4x16x16xf32, #tpu.memory_space<vmem>>, %arg10: memref<4x16x1xf32, #tpu.memory_space<vmem>>, %arg11: memref<4x16x1xf32, #tpu.memory_space<vmem>>, %arg12: memref<4x16x16xf32, #tpu.memory_space<vmem>>, %arg13: memref<16x1xf32, #tpu.memory_space<vmem>>, %arg14: memref<16x1xf32, #tpu.memory_space<vmem>>, %arg15: memref<4x16xf32, #tpu.memory_space<vmem>>, %arg16: memref<1x16x128xf32, #tpu.memory_space<vmem>>, %arg17: memref<5x16x128xf32, #tpu.memory_space<vmem>>, %arg18: memref<4x16x40xf32, #tpu.memory_space<vmem>>, %arg19: memref<4x16x40xf32, #tpu.memory_space<vmem>>, %arg20: memref<72x128xf32, #tpu.memory_space<vmem>>) attributes {dimension_semantics = [#tpu.dimension_semantics<parallel>, #tpu.dimension_semantics<arbitrary>, #tpu.dimension_semantics<arbitrary>], iteration_bounds = array<i64: 2, 2, 5>, scalar_prefetch = 0 : i64, scratch_operands = 4 : i64, tpu.core_type = #tpu.core_type<tc>, window_params = [{transform_indices = @transform_0, window_bounds = array<i64: 1, 32, 128>}, {transform_indices = @transform_1, window_bounds = array<i64: 4, 128>}, {pipeline_mode = #tpu.pipeline_mode<synchronous>, transform_indices = @transform_2, window_bounds = array<i64: 16, 32>}, {pipeline_mode = #tpu.pipeline_mode<synchronous>, transform_indices = @transform_3, window_bounds = array<i64: 16, 1>}, {pipeline_mode = #tpu.pipeline_mode<synchronous>, transform_indices = @transform_4, window_bounds = array<i64: 16, 1>}, {pipeline_mode = #tpu.pipeline_mode<synchronous>, transform_indices = @transform_5, window_bounds = array<i64: 4, 1, 40>}, {pipeline_mode = #tpu.pipeline_mode<synchronous>, transform_indices = @transform_6, window_bounds = array<i64: 4, 16, 16>}, {pipeline_mode = #tpu.pipeline_mode<synchronous>, transform_indices = @transform_7, window_bounds = array<i64: 4, 16, 1>}, {pipeline_mode = #tpu.pipeline_mode<synchronous>, transform_indices = @transform_8, window_bounds = array<i64: 4, 16, 1>}, {pipeline_mode = #tpu.pipeline_mode<synchronous>, transform_indices = @transform_9, window_bounds = array<i64: 4, 16, 16>}, {pipeline_mode = #tpu.pipeline_mode<synchronous>, transform_indices = @transform_10, window_bounds = array<i64: 16, 1>}, {pipeline_mode = #tpu.pipeline_mode<synchronous>, transform_indices = @transform_11, window_bounds = array<i64: 16, 1>}, {pipeline_mode = #tpu.pipeline_mode<synchronous>, transform_indices = @transform_12, window_bounds = array<i64: 4, 16>}, {transform_indices = @transform_13, window_bounds = array<i64: 1, 16, 128>}]} {
    %c0 = arith.constant 0 : index
    %c0_0 = arith.constant 0 : index
    %0 = vector.load %arg4[%c0, %c0_0] : memref<4x128xi32, #tpu.memory_space<vmem>>, vector<4x128xi32>
    %1 = tpu.iota {dimensions = array<i32: 0>} : vector<40x128xi32>
    %2 = vector.extract_strided_slice %0 {offsets = [0, 0], sizes = [1, 128], strides = [1, 1]} : vector<4x128xi32> to vector<1x128xi32>
    %3 = vector.broadcast %2 : vector<1x128xi32> to vector<40x128xi32>
    %4 = arith.cmpi eq, %1, %3 : vector<40x128xi32>
    %5 = arith.extui %4 : vector<40x128xi1> to vector<40x128xi32>
    %6 = arith.sitofp %5 : vector<40x128xi32> to vector<40x128xf32>
    %c0_1 = arith.constant 0 : index
    %c0_2 = arith.constant 0 : index
    %7 = vector.load %arg20[%c0_1, %c0_2] : memref<72x128xf32, #tpu.memory_space<vmem>>, vector<40x128xf32>
    tpu.vector_store %arg20[%c0_1, %c0_2], %6 {strides = array<i32>} : memref<72x128xf32, #tpu.memory_space<vmem>>, vector<40x128xf32>,
    %8 = tpu.iota {dimensions = array<i32: 0>} : vector<16x128xi32>
    %9 = vector.extract_strided_slice %0 {offsets = [1, 0], sizes = [1, 128], strides = [1, 1]} : vector<4x128xi32> to vector<1x128xi32>
    %10 = vector.broadcast %9 : vector<1x128xi32> to vector<16x128xi32>
    %11 = arith.cmpi eq, %8, %10 : vector<16x128xi32>
    %12 = arith.extui %11 : vector<16x128xi1> to vector<16x128xi32>
    %13 = arith.sitofp %12 : vector<16x128xi32> to vector<16x128xf32>
    %c40 = arith.constant 40 : index
    %c0_3 = arith.constant 0 : index
    %14 = vector.load %arg20[%c40, %c0_3] : memref<72x128xf32, #tpu.memory_space<vmem>>, vector<16x128xf32>
    tpu.vector_store %arg20[%c40, %c0_3], %13 {strides = array<i32>} : memref<72x128xf32, #tpu.memory_space<vmem>>, vector<16x128xf32>,
    %15 = tpu.iota {dimensions = array<i32: 0>} : vector<8x128xi32>
    %16 = vector.extract_strided_slice %0 {offsets = [2, 0], sizes = [1, 128], strides = [1, 1]} : vector<4x128xi32> to vector<1x128xi32>
    %17 = vector.broadcast %16 : vector<1x128xi32> to vector<8x128xi32>
    %18 = arith.cmpi eq, %15, %17 : vector<8x128xi32>
    %19 = arith.extui %18 : vector<8x128xi1> to vector<8x128xi32>
    %20 = arith.sitofp %19 : vector<8x128xi32> to vector<8x128xf32>
    %c56 = arith.constant 56 : index
    %c0_4 = arith.constant 0 : index
    %21 = vector.load %arg20[%c56, %c0_4] : memref<72x128xf32, #tpu.memory_space<vmem>>, vector<8x128xf32>
    tpu.vector_store %arg20[%c56, %c0_4], %20 {strides = array<i32>} : memref<72x128xf32, #tpu.memory_space<vmem>>, vector<8x128xf32>,
    %22 = tpu.iota {dimensions = array<i32: 0>} : vector<8x128xi32>
    %23 = vector.extract_strided_slice %0 {offsets = [3, 0], sizes = [1, 128], strides = [1, 1]} : vector<4x128xi32> to vector<1x128xi32>
    %24 = vector.broadcast %23 : vector<1x128xi32> to vector<8x128xi32>
    %25 = arith.cmpi eq, %22, %24 : vector<8x128xi32>
    %26 = arith.extui %25 : vector<8x128xi1> to vector<8x128xi32>
    %27 = arith.sitofp %26 : vector<8x128xi32> to vector<8x128xf32>
    %c64 = arith.constant 64 : index
    %c0_5 = arith.constant 0 : index
    %28 = vector.load %arg20[%c64, %c0_5] : memref<72x128xf32, #tpu.memory_space<vmem>>, vector<8x128xf32>
    tpu.vector_store %arg20[%c64, %c0_5], %27 {strides = array<i32>} : memref<72x128xf32, #tpu.memory_space<vmem>>, vector<8x128xf32>,
    %c0_i32 = arith.constant 0 : i32
    %29 = arith.cmpi eq, %arg1, %c0_i32 : i32
    %30 = arith.extui %29 : i1 to i32
    %c0_i32_6 = arith.constant 0 : i32
    %31 = arith.cmpi ne, %30, %c0_i32_6 : i32
    scf.if %31 {
      %c0_8 = arith.constant 0 : index
      %c0_9 = arith.constant 0 : index
      %35 = vector.load %arg5[%c0_8, %c0_9] : memref<16x32xf32, #tpu.memory_space<vmem>>, vector<16x32xf32>
      %c0_10 = arith.constant 0 : index
      %c0_11 = arith.constant 0 : index
      %c0_12 = arith.constant 0 : index
      %36 = vector.load %arg3[%c0_10, %c0_11, %c0_12] : memref<1x32x128xf32, #tpu.memory_space<vmem>>, vector<1x32x128xf32>
      %37 = vector.shape_cast %36 : vector<1x32x128xf32> to vector<32x128xf32>
      %cst = arith.constant dense<0.000000e+00> : vector<16x128xf32>
      %38 = tpu.matmul %35, %37, %cst {dimension_numbers = #tpu.dot_dimension_numbers<[1], [0], [0], [1], [0, 0, 1, 1], [], []>} : vector<16x32xf32>, vector<32x128xf32>, vector<16x128xf32> -> vector<16x128xf32>
      %c0_13 = arith.constant 0 : index
      %c0_14 = arith.constant 0 : index
      %39 = vector.load %arg6[%c0_13, %c0_14] : memref<16x1xf32, #tpu.memory_space<vmem>>, vector<16x1xf32>
      %40 = vector.broadcast %39 : vector<16x1xf32> to vector<16x128xf32>
      %41 = arith.mulf %38, %40 : vector<16x128xf32>
      %c0_15 = arith.constant 0 : index
      %c0_16 = arith.constant 0 : index
      %42 = vector.load %arg7[%c0_15, %c0_16] : memref<16x1xf32, #tpu.memory_space<vmem>>, vector<16x1xf32>
      %43 = vector.broadcast %42 : vector<16x1xf32> to vector<16x128xf32>
      %44 = arith.addf %41, %43 : vector<16x128xf32>
      %cst_17 = arith.constant 0.000000e+00 : f32
      %45 = vector.broadcast %cst_17 : f32 to vector<16x128xf32>
      %46 = arith.maximumf %44, %45 : vector<16x128xf32>
      %47 = arith.index_cast %arg2 : i32 to index
      %c0_18 = arith.constant 0 : index
      %c0_19 = arith.constant 0 : index
      %48 = vector.load %arg17[%47, %c0_18, %c0_19] : memref<5x16x128xf32, #tpu.memory_space<vmem>>, vector<1x16x128xf32>
      %49 = vector.shape_cast %48 : vector<1x16x128xf32> to vector<16x128xf32>
      %50 = vector.shape_cast %46 : vector<16x128xf32> to vector<1x16x128xf32>
      tpu.vector_store %arg17[%47, %c0_18, %c0_19], %50 {strides = array<i32>} : memref<5x16x128xf32, #tpu.memory_space<vmem>>, vector<1x16x128xf32>,
      %c0_20 = arith.constant 0 : index
      %c0_21 = arith.constant 0 : index
      %51 = vector.load %arg20[%c0_20, %c0_21] : memref<72x128xf32, #tpu.memory_space<vmem>>, vector<72x128xf32>
      %cst_22 = arith.constant dense<0.000000e+00> : vector<16x72xf32>
      %52 = tpu.matmul %46, %51, %cst_22 {dimension_numbers = #tpu.dot_dimension_numbers<[1], [1], [0], [0], [0, 0, 1, 0], [], []>} : vector<16x128xf32>, vector<72x128xf32>, vector<16x72xf32> -> vector<16x72xf32>
      %c0_i32_23 = arith.constant 0 : i32
      %53 = arith.cmpi eq, %arg2, %c0_i32_23 : i32
      %54 = arith.extui %53 : i1 to i32
      %c0_i32_24 = arith.constant 0 : i32
      %55 = arith.cmpi ne, %54, %c0_i32_24 : i32
      scf.if %55 {
        %cst_47 = arith.constant 0.000000e+00 : f32
        %87 = vector.broadcast %cst_47 : f32 to vector<4x16x40xf32>
        %c0_48 = arith.constant 0 : index
        %c0_49 = arith.constant 0 : index
        %c0_50 = arith.constant 0 : index
        %88 = vector.load %arg18[%c0_48, %c0_49, %c0_50] : memref<4x16x40xf32, #tpu.memory_space<vmem>>, vector<4x16x40xf32>
        tpu.vector_store %arg18[%c0_48, %c0_49, %c0_50], %87 {strides = array<i32>} : memref<4x16x40xf32, #tpu.memory_space<vmem>>, vector<4x16x40xf32>,
      } else {
      }
      %c0_25 = arith.constant 0 : index
      %c0_26 = arith.constant 0 : index
      %c0_27 = arith.constant 0 : index
      %56 = vector.load %arg18[%c0_25, %c0_26, %c0_27] : memref<4x16x40xf32, #tpu.memory_space<vmem>>, vector<1x16x40xf32>
      %57 = vector.shape_cast %56 : vector<1x16x40xf32> to vector<16x40xf32>
      %58 = vector.extract_strided_slice %52 {offsets = [0, 0], sizes = [16, 40], strides = [1, 1]} : vector<16x72xf32> to vector<16x40xf32>
      %59 = arith.addf %57, %58 : vector<16x40xf32>
      %c0_28 = arith.constant 0 : index
      %c0_29 = arith.constant 0 : index
      %c0_30 = arith.constant 0 : index
      %60 = vector.load %arg18[%c0_28, %c0_29, %c0_30] : memref<4x16x40xf32, #tpu.memory_space<vmem>>, vector<1x16x40xf32>
      %61 = vector.shape_cast %60 : vector<1x16x40xf32> to vector<16x40xf32>
      %62 = vector.shape_cast %59 : vector<16x40xf32> to vector<1x16x40xf32>
      tpu.vector_store %arg18[%c0_28, %c0_29, %c0_30], %62 {strides = array<i32>} : memref<4x16x40xf32, #tpu.memory_space<vmem>>, vector<1x16x40xf32>,
      %c1 = arith.constant 1 : index
      %c0_31 = arith.constant 0 : index
      %c0_32 = arith.constant 0 : index
      %63 = vector.load %arg18[%c1, %c0_31, %c0_32] : memref<4x16x40xf32, #tpu.memory_space<vmem>>, vector<1x16x16xf32>
      %64 = vector.shape_cast %63 : vector<1x16x16xf32> to vector<16x16xf32>
      %65 = vector.extract_strided_slice %52 {offsets = [0, 40], sizes = [16, 16], strides = [1, 1]} : vector<16x72xf32> to vector<16x16xf32>
      %66 = arith.addf %64, %65 : vector<16x16xf32>
      %c1_33 = arith.constant 1 : index
      %c0_34 = arith.constant 0 : index
      %c0_35 = arith.constant 0 : index
      %67 = vector.load %arg18[%c1_33, %c0_34, %c0_35] : memref<4x16x40xf32, #tpu.memory_space<vmem>>, vector<1x16x16xf32>
      %68 = vector.shape_cast %67 : vector<1x16x16xf32> to vector<16x16xf32>
      %69 = vector.shape_cast %66 : vector<16x16xf32> to vector<1x16x16xf32>
      tpu.vector_store %arg18[%c1_33, %c0_34, %c0_35], %69 {strides = array<i32>} : memref<4x16x40xf32, #tpu.memory_space<vmem>>, vector<1x16x16xf32>,
      %c2 = arith.constant 2 : index
      %c0_36 = arith.constant 0 : index
      %c0_37 = arith.constant 0 : index
      %70 = vector.load %arg18[%c2, %c0_36, %c0_37] : memref<4x16x40xf32, #tpu.memory_space<vmem>>, vector<1x16x8xf32>
      %71 = vector.shape_cast %70 : vector<1x16x8xf32> to vector<16x8xf32>
      %72 = vector.extract_strided_slice %52 {offsets = [0, 56], sizes = [16, 8], strides = [1, 1]} : vector<16x72xf32> to vector<16x8xf32>
      %73 = arith.addf %71, %72 : vector<16x8xf32>
      %c2_38 = arith.constant 2 : index
      %c0_39 = arith.constant 0 : index
      %c0_40 = arith.constant 0 : index
      %74 = vector.load %arg18[%c2_38, %c0_39, %c0_40] : memref<4x16x40xf32, #tpu.memory_space<vmem>>, vector<1x16x8xf32>
      %75 = vector.shape_cast %74 : vector<1x16x8xf32> to vector<16x8xf32>
      %76 = vector.shape_cast %73 : vector<16x8xf32> to vector<1x16x8xf32>
      tpu.vector_store %arg18[%c2_38, %c0_39, %c0_40], %76 {strides = array<i32>} : memref<4x16x40xf32, #tpu.memory_space<vmem>>, vector<1x16x8xf32>,
      %c3 = arith.constant 3 : index
      %c0_41 = arith.constant 0 : index
      %c0_42 = arith.constant 0 : index
      %77 = vector.load %arg18[%c3, %c0_41, %c0_42] : memref<4x16x40xf32, #tpu.memory_space<vmem>>, vector<1x16x8xf32>
      %78 = vector.shape_cast %77 : vector<1x16x8xf32> to vector<16x8xf32>
      %79 = vector.extract_strided_slice %52 {offsets = [0, 64], sizes = [16, 8], strides = [1, 1]} : vector<16x72xf32> to vector<16x8xf32>
      %80 = arith.addf %78, %79 : vector<16x8xf32>
      %c3_43 = arith.constant 3 : index
      %c0_44 = arith.constant 0 : index
      %c0_45 = arith.constant 0 : index
      %81 = vector.load %arg18[%c3_43, %c0_44, %c0_45] : memref<4x16x40xf32, #tpu.memory_space<vmem>>, vector<1x16x8xf32>
      %82 = vector.shape_cast %81 : vector<1x16x8xf32> to vector<16x8xf32>
      %83 = vector.shape_cast %80 : vector<16x8xf32> to vector<1x16x8xf32>
      tpu.vector_store %arg18[%c3_43, %c0_44, %c0_45], %83 {strides = array<i32>} : memref<4x16x40xf32, #tpu.memory_space<vmem>>, vector<1x16x8xf32>,
      %c4_i32 = arith.constant 4 : i32
      %84 = arith.cmpi eq, %arg2, %c4_i32 : i32
      %85 = arith.extui %84 : i1 to i32
      %c0_i32_46 = arith.constant 0 : i32
      %86 = arith.cmpi ne, %85, %c0_i32_46 : i32
      scf.if %86 {
        %c0_47 = arith.constant 0 : index
        %c0_48 = arith.constant 0 : index
        %c0_49 = arith.constant 0 : index
        %87 = vector.load %arg18[%c0_47, %c0_48, %c0_49] : memref<4x16x40xf32, #tpu.memory_space<vmem>>, vector<1x16x40xf32>
        %88 = vector.shape_cast %87 : vector<1x16x40xf32> to vector<16x40xf32>
        %c0_50 = arith.constant 0 : index
        %c0_51 = arith.constant 0 : index
        %c0_52 = arith.constant 0 : index
        %89 = vector.load %arg8[%c0_50, %c0_51, %c0_52] : memref<4x1x40xf32, #tpu.memory_space<vmem>>, vector<1x1x40xf32>
        %90 = vector.shape_cast %89 : vector<1x1x40xf32> to vector<1x40xf32>
        %91 = vector.broadcast %90 : vector<1x40xf32> to vector<16x40xf32>
        %92 = arith.mulf %88, %91 : vector<16x40xf32>
        %c0_53 = arith.constant 0 : index
        %c0_54 = arith.constant 0 : index
        %c0_55 = arith.constant 0 : index
        %93 = vector.load %arg9[%c0_53, %c0_54, %c0_55] : memref<4x16x16xf32, #tpu.memory_space<vmem>>, vector<1x16x16xf32>
        %94 = vector.shape_cast %93 : vector<1x16x16xf32> to vector<16x16xf32>
        %cst_56 = arith.constant dense<0.000000e+00> : vector<16x40xf32>
        %95 = tpu.matmul %94, %92, %cst_56 {dimension_numbers = #tpu.dot_dimension_numbers<[1], [0], [0], [1], [0, 0, 1, 1], [], []>} : vector<16x16xf32>, vector<16x40xf32>, vector<16x40xf32> -> vector<16x40xf32>
        %c0_57 = arith.constant 0 : index
        %c0_58 = arith.constant 0 : index
        %c0_59 = arith.constant 0 : index
        %96 = vector.load %arg10[%c0_57, %c0_58, %c0_59] : memref<4x16x1xf32, #tpu.memory_space<vmem>>, vector<1x16x1xf32>
        %97 = vector.shape_cast %96 : vector<1x16x1xf32> to vector<16x1xf32>
        %98 = vector.broadcast %97 : vector<16x1xf32> to vector<16x40xf32>
        %99 = arith.mulf %95, %98 : vector<16x40xf32>
        %c0_60 = arith.constant 0 : index
        %c0_61 = arith.constant 0 : index
        %c0_62 = arith.constant 0 : index
        %100 = vector.load %arg11[%c0_60, %c0_61, %c0_62] : memref<4x16x1xf32, #tpu.memory_space<vmem>>, vector<1x16x1xf32>
        %101 = vector.shape_cast %100 : vector<1x16x1xf32> to vector<16x1xf32>
        %102 = vector.broadcast %101 : vector<16x1xf32> to vector<16x40xf32>
        %103 = arith.addf %99, %102 : vector<16x40xf32>
        %cst_63 = arith.constant 0.000000e+00 : f32
        %104 = vector.broadcast %cst_63 : f32 to vector<16x40xf32>
        %105 = arith.maximumf %103, %104 : vector<16x40xf32>
        %c0_64 = arith.constant 0 : index
        %c0_65 = arith.constant 0 : index
        %c0_66 = arith.constant 0 : index
        %106 = vector.load %arg18[%c0_64, %c0_65, %c0_66] : memref<4x16x40xf32, #tpu.memory_space<vmem>>, vector<1x16x40xf32>
        %107 = vector.shape_cast %106 : vector<1x16x40xf32> to vector<16x40xf32>
        %108 = vector.shape_cast %105 : vector<16x40xf32> to vector<1x16x40xf32>
        tpu.vector_store %arg18[%c0_64, %c0_65, %c0_66], %108 {strides = array<i32>} : memref<4x16x40xf32, #tpu.memory_space<vmem>>, vector<1x16x40xf32>,
        %c0_67 = arith.constant 0 : index
        %c0_68 = arith.constant 0 : index
        %c0_69 = arith.constant 0 : index
        %109 = vector.load %arg12[%c0_67, %c0_68, %c0_69] : memref<4x16x16xf32, #tpu.memory_space<vmem>>, vector<1x16x16xf32>
        %110 = vector.shape_cast %109 : vector<1x16x16xf32> to vector<16x16xf32>
        %cst_70 = arith.constant dense<0.000000e+00> : vector<16x40xf32>
        %111 = tpu.matmul %110, %105, %cst_70 {dimension_numbers = #tpu.dot_dimension_numbers<[1], [0], [0], [1], [0, 0, 1, 1], [], []>} : vector<16x16xf32>, vector<16x40xf32>, vector<16x40xf32> -> vector<16x40xf32>
        %c0_71 = arith.constant 0 : index
        %c0_72 = arith.constant 0 : index
        %c0_73 = arith.constant 0 : index
        %112 = vector.load %arg19[%c0_71, %c0_72, %c0_73] : memref<4x16x40xf32, #tpu.memory_space<vmem>>, vector<1x16x40xf32>
        %113 = vector.shape_cast %112 : vector<1x16x40xf32> to vector<16x40xf32>
        %114 = vector.shape_cast %111 : vector<16x40xf32> to vector<1x16x40xf32>
        tpu.vector_store %arg19[%c0_71, %c0_72, %c0_73], %114 {strides = array<i32>} : memref<4x16x40xf32, #tpu.memory_space<vmem>>, vector<1x16x40xf32>,
        %c1_74 = arith.constant 1 : index
        %c0_75 = arith.constant 0 : index
        %c0_76 = arith.constant 0 : index
        %115 = vector.load %arg18[%c1_74, %c0_75, %c0_76] : memref<4x16x40xf32, #tpu.memory_space<vmem>>, vector<1x16x16xf32>
        %116 = vector.shape_cast %115 : vector<1x16x16xf32> to vector<16x16xf32>
        %c1_77 = arith.constant 1 : index
        %c0_78 = arith.constant 0 : index
        %c0_79 = arith.constant 0 : index
        %117 = vector.load %arg8[%c1_77, %c0_78, %c0_79] : memref<4x1x40xf32, #tpu.memory_space<vmem>>, vector<1x1x16xf32>
        %118 = vector.shape_cast %117 : vector<1x1x16xf32> to vector<1x16xf32>
        %119 = vector.broadcast %118 : vector<1x16xf32> to vector<16x16xf32>
        %120 = arith.mulf %116, %119 : vector<16x16xf32>
        %c1_80 = arith.constant 1 : index
        %c0_81 = arith.constant 0 : index
        %c0_82 = arith.constant 0 : index
        %121 = vector.load %arg9[%c1_80, %c0_81, %c0_82] : memref<4x16x16xf32, #tpu.memory_space<vmem>>, vector<1x16x16xf32>
        %122 = vector.shape_cast %121 : vector<1x16x16xf32> to vector<16x16xf32>
        %cst_83 = arith.constant dense<0.000000e+00> : vector<16x16xf32>
        %123 = tpu.matmul %122, %120, %cst_83 {dimension_numbers = #tpu.dot_dimension_numbers<[1], [0], [0], [1], [0, 0, 1, 1], [], []>} : vector<16x16xf32>, vector<16x16xf32>, vector<16x16xf32> -> vector<16x16xf32>
        %c1_84 = arith.constant 1 : index
        %c0_85 = arith.constant 0 : index
        %c0_86 = arith.constant 0 : index
        %124 = vector.load %arg10[%c1_84, %c0_85, %c0_86] : memref<4x16x1xf32, #tpu.memory_space<vmem>>, vector<1x16x1xf32>
        %125 = vector.shape_cast %124 : vector<1x16x1xf32> to vector<16x1xf32>
        %126 = vector.broadcast %125 : vector<16x1xf32> to vector<16x16xf32>
        %127 = arith.mulf %123, %126 : vector<16x16xf32>
        %c1_87 = arith.constant 1 : index
        %c0_88 = arith.constant 0 : index
        %c0_89 = arith.constant 0 : index
        %128 = vector.load %arg11[%c1_87, %c0_88, %c0_89] : memref<4x16x1xf32, #tpu.memory_space<vmem>>, vector<1x16x1xf32>
        %129 = vector.shape_cast %128 : vector<1x16x1xf32> to vector<16x1xf32>
        %130 = vector.broadcast %129 : vector<16x1xf32> to vector<16x16xf32>
        %131 = arith.addf %127, %130 : vector<16x16xf32>
        %cst_90 = arith.constant 0.000000e+00 : f32
        %132 = vector.broadcast %cst_90 : f32 to vector<16x16xf32>
        %133 = arith.maximumf %131, %132 : vector<16x16xf32>
        %c1_91 = arith.constant 1 : index
        %c0_92 = arith.constant 0 : index
        %c0_93 = arith.constant 0 : index
        %134 = vector.load %arg18[%c1_91, %c0_92, %c0_93] : memref<4x16x40xf32, #tpu.memory_space<vmem>>, vector<1x16x16xf32>
        %135 = vector.shape_cast %134 : vector<1x16x16xf32> to vector<16x16xf32>
        %136 = vector.shape_cast %133 : vector<16x16xf32> to vector<1x16x16xf32>
        tpu.vector_store %arg18[%c1_91, %c0_92, %c0_93], %136 {strides = array<i32>} : memref<4x16x40xf32, #tpu.memory_space<vmem>>, vector<1x16x16xf32>,
        %c1_94 = arith.constant 1 : index
        %c0_95 = arith.constant 0 : index
        %c0_96 = arith.constant 0 : index
        %137 = vector.load %arg12[%c1_94, %c0_95, %c0_96] : memref<4x16x16xf32, #tpu.memory_space<vmem>>, vector<1x16x16xf32>
        %138 = vector.shape_cast %137 : vector<1x16x16xf32> to vector<16x16xf32>
        %cst_97 = arith.constant dense<0.000000e+00> : vector<16x16xf32>
        %139 = tpu.matmul %138, %133, %cst_97 {dimension_numbers = #tpu.dot_dimension_numbers<[1], [0], [0], [1], [0, 0, 1, 1], [], []>} : vector<16x16xf32>, vector<16x16xf32>, vector<16x16xf32> -> vector<16x16xf32>
        %c1_98 = arith.constant 1 : index
        %c0_99 = arith.constant 0 : index
        %c0_100 = arith.constant 0 : index
        %140 = vector.load %arg19[%c1_98, %c0_99, %c0_100] : memref<4x16x40xf32, #tpu.memory_space<vmem>>, vector<1x16x16xf32>
        %141 = vector.shape_cast %140 : vector<1x16x16xf32> to vector<16x16xf32>
        %142 = vector.shape_cast %139 : vector<16x16xf32> to vector<1x16x16xf32>
        tpu.vector_store %arg19[%c1_98, %c0_99, %c0_100], %142 {strides = array<i32>} : memref<4x16x40xf32, #tpu.memory_space<vmem>>, vector<1x16x16xf32>,
        %c2_101 = arith.constant 2 : index
        %c0_102 = arith.constant 0 : index
        %c0_103 = arith.constant 0 : index
        %143 = vector.load %arg18[%c2_101, %c0_102, %c0_103] : memref<4x16x40xf32, #tpu.memory_space<vmem>>, vector<1x16x8xf32>
        %144 = vector.shape_cast %143 : vector<1x16x8xf32> to vector<16x8xf32>
        %c2_104 = arith.constant 2 : index
        %c0_105 = arith.constant 0 : index
        %c0_106 = arith.constant 0 : index
        %145 = vector.load %arg8[%c2_104, %c0_105, %c0_106] : memref<4x1x40xf32, #tpu.memory_space<vmem>>, vector<1x1x8xf32>
        %146 = vector.shape_cast %145 : vector<1x1x8xf32> to vector<1x8xf32>
        %147 = vector.broadcast %146 : vector<1x8xf32> to vector<16x8xf32>
        %148 = arith.mulf %144, %147 : vector<16x8xf32>
        %c2_107 = arith.constant 2 : index
        %c0_108 = arith.constant 0 : index
        %c0_109 = arith.constant 0 : index
        %149 = vector.load %arg9[%c2_107, %c0_108, %c0_109] : memref<4x16x16xf32, #tpu.memory_space<vmem>>, vector<1x16x16xf32>
        %150 = vector.shape_cast %149 : vector<1x16x16xf32> to vector<16x16xf32>
        %cst_110 = arith.constant dense<0.000000e+00> : vector<16x8xf32>
        %151 = tpu.matmul %150, %148, %cst_110 {dimension_numbers = #tpu.dot_dimension_numbers<[1], [0], [0], [1], [0, 0, 1, 1], [], []>} : vector<16x16xf32>, vector<16x8xf32>, vector<16x8xf32> -> vector<16x8xf32>
        %c2_111 = arith.constant 2 : index
        %c0_112 = arith.constant 0 : index
        %c0_113 = arith.constant 0 : index
        %152 = vector.load %arg10[%c2_111, %c0_112, %c0_113] : memref<4x16x1xf32, #tpu.memory_space<vmem>>, vector<1x16x1xf32>
        %153 = vector.shape_cast %152 : vector<1x16x1xf32> to vector<16x1xf32>
        %154 = vector.broadcast %153 : vector<16x1xf32> to vector<16x8xf32>
        %155 = arith.mulf %151, %154 : vector<16x8xf32>
        %c2_114 = arith.constant 2 : index
        %c0_115 = arith.constant 0 : index
        %c0_116 = arith.constant 0 : index
        %156 = vector.load %arg11[%c2_114, %c0_115, %c0_116] : memref<4x16x1xf32, #tpu.memory_space<vmem>>, vector<1x16x1xf32>
        %157 = vector.shape_cast %156 : vector<1x16x1xf32> to vector<16x1xf32>
        %158 = vector.broadcast %157 : vector<16x1xf32> to vector<16x8xf32>
        %159 = arith.addf %155, %158 : vector<16x8xf32>
        %cst_117 = arith.constant 0.000000e+00 : f32
        %160 = vector.broadcast %cst_117 : f32 to vector<16x8xf32>
        %161 = arith.maximumf %159, %160 : vector<16x8xf32>
        %c2_118 = arith.constant 2 : index
        %c0_119 = arith.constant 0 : index
        %c0_120 = arith.constant 0 : index
        %162 = vector.load %arg18[%c2_118, %c0_119, %c0_120] : memref<4x16x40xf32, #tpu.memory_space<vmem>>, vector<1x16x8xf32>
        %163 = vector.shape_cast %162 : vector<1x16x8xf32> to vector<16x8xf32>
        %164 = vector.shape_cast %161 : vector<16x8xf32> to vector<1x16x8xf32>
        tpu.vector_store %arg18[%c2_118, %c0_119, %c0_120], %164 {strides = array<i32>} : memref<4x16x40xf32, #tpu.memory_space<vmem>>, vector<1x16x8xf32>,
        %c2_121 = arith.constant 2 : index
        %c0_122 = arith.constant 0 : index
        %c0_123 = arith.constant 0 : index
        %165 = vector.load %arg12[%c2_121, %c0_122, %c0_123] : memref<4x16x16xf32, #tpu.memory_space<vmem>>, vector<1x16x16xf32>
        %166 = vector.shape_cast %165 : vector<1x16x16xf32> to vector<16x16xf32>
        %cst_124 = arith.constant dense<0.000000e+00> : vector<16x8xf32>
        %167 = tpu.matmul %166, %161, %cst_124 {dimension_numbers = #tpu.dot_dimension_numbers<[1], [0], [0], [1], [0, 0, 1, 1], [], []>} : vector<16x16xf32>, vector<16x8xf32>, vector<16x8xf32> -> vector<16x8xf32>
        %c2_125 = arith.constant 2 : index
        %c0_126 = arith.constant 0 : index
        %c0_127 = arith.constant 0 : index
        %168 = vector.load %arg19[%c2_125, %c0_126, %c0_127] : memref<4x16x40xf32, #tpu.memory_space<vmem>>, vector<1x16x8xf32>
        %169 = vector.shape_cast %168 : vector<1x16x8xf32> to vector<16x8xf32>
        %170 = vector.shape_cast %167 : vector<16x8xf32> to vector<1x16x8xf32>
        tpu.vector_store %arg19[%c2_125, %c0_126, %c0_127], %170 {strides = array<i32>} : memref<4x16x40xf32, #tpu.memory_space<vmem>>, vector<1x16x8xf32>,
        %c3_128 = arith.constant 3 : index
        %c0_129 = arith.constant 0 : index
        %c0_130 = arith.constant 0 : index
        %171 = vector.load %arg18[%c3_128, %c0_129, %c0_130] : memref<4x16x40xf32, #tpu.memory_space<vmem>>, vector<1x16x8xf32>
        %172 = vector.shape_cast %171 : vector<1x16x8xf32> to vector<16x8xf32>
        %c3_131 = arith.constant 3 : index
        %c0_132 = arith.constant 0 : index
        %c0_133 = arith.constant 0 : index
        %173 = vector.load %arg8[%c3_131, %c0_132, %c0_133] : memref<4x1x40xf32, #tpu.memory_space<vmem>>, vector<1x1x8xf32>
        %174 = vector.shape_cast %173 : vector<1x1x8xf32> to vector<1x8xf32>
        %175 = vector.broadcast %174 : vector<1x8xf32> to vector<16x8xf32>
        %176 = arith.mulf %172, %175 : vector<16x8xf32>
        %c3_134 = arith.constant 3 : index
        %c0_135 = arith.constant 0 : index
        %c0_136 = arith.constant 0 : index
        %177 = vector.load %arg9[%c3_134, %c0_135, %c0_136] : memref<4x16x16xf32, #tpu.memory_space<vmem>>, vector<1x16x16xf32>
        %178 = vector.shape_cast %177 : vector<1x16x16xf32> to vector<16x16xf32>
        %cst_137 = arith.constant dense<0.000000e+00> : vector<16x8xf32>
        %179 = tpu.matmul %178, %176, %cst_137 {dimension_numbers = #tpu.dot_dimension_numbers<[1], [0], [0], [1], [0, 0, 1, 1], [], []>} : vector<16x16xf32>, vector<16x8xf32>, vector<16x8xf32> -> vector<16x8xf32>
        %c3_138 = arith.constant 3 : index
        %c0_139 = arith.constant 0 : index
        %c0_140 = arith.constant 0 : index
        %180 = vector.load %arg10[%c3_138, %c0_139, %c0_140] : memref<4x16x1xf32, #tpu.memory_space<vmem>>, vector<1x16x1xf32>
        %181 = vector.shape_cast %180 : vector<1x16x1xf32> to vector<16x1xf32>
        %182 = vector.broadcast %181 : vector<16x1xf32> to vector<16x8xf32>
        %183 = arith.mulf %179, %182 : vector<16x8xf32>
        %c3_141 = arith.constant 3 : index
        %c0_142 = arith.constant 0 : index
        %c0_143 = arith.constant 0 : index
        %184 = vector.load %arg11[%c3_141, %c0_142, %c0_143] : memref<4x16x1xf32, #tpu.memory_space<vmem>>, vector<1x16x1xf32>
        %185 = vector.shape_cast %184 : vector<1x16x1xf32> to vector<16x1xf32>
        %186 = vector.broadcast %185 : vector<16x1xf32> to vector<16x8xf32>
        %187 = arith.addf %183, %186 : vector<16x8xf32>
        %cst_144 = arith.constant 0.000000e+00 : f32
        %188 = vector.broadcast %cst_144 : f32 to vector<16x8xf32>
        %189 = arith.maximumf %187, %188 : vector<16x8xf32>
        %c3_145 = arith.constant 3 : index
        %c0_146 = arith.constant 0 : index
        %c0_147 = arith.constant 0 : index
        %190 = vector.load %arg18[%c3_145, %c0_146, %c0_147] : memref<4x16x40xf32, #tpu.memory_space<vmem>>, vector<1x16x8xf32>
        %191 = vector.shape_cast %190 : vector<1x16x8xf32> to vector<16x8xf32>
        %192 = vector.shape_cast %189 : vector<16x8xf32> to vector<1x16x8xf32>
        tpu.vector_store %arg18[%c3_145, %c0_146, %c0_147], %192 {strides = array<i32>} : memref<4x16x40xf32, #tpu.memory_space<vmem>>, vector<1x16x8xf32>,
        %c3_148 = arith.constant 3 : index
        %c0_149 = arith.constant 0 : index
        %c0_150 = arith.constant 0 : index
        %193 = vector.load %arg12[%c3_148, %c0_149, %c0_150] : memref<4x16x16xf32, #tpu.memory_space<vmem>>, vector<1x16x16xf32>
        %194 = vector.shape_cast %193 : vector<1x16x16xf32> to vector<16x16xf32>
        %cst_151 = arith.constant dense<0.000000e+00> : vector<16x8xf32>
        %195 = tpu.matmul %194, %189, %cst_151 {dimension_numbers = #tpu.dot_dimension_numbers<[1], [0], [0], [1], [0, 0, 1, 1], [], []>} : vector<16x16xf32>, vector<16x8xf32>, vector<16x8xf32> -> vector<16x8xf32>
        %c3_152 = arith.constant 3 : index
        %c0_153 = arith.constant 0 : index
        %c0_154 = arith.constant 0 : index
        %196 = vector.load %arg19[%c3_152, %c0_153, %c0_154] : memref<4x16x40xf32, #tpu.memory_space<vmem>>, vector<1x16x8xf32>
        %197 = vector.shape_cast %196 : vector<1x16x8xf32> to vector<16x8xf32>
        %198 = vector.shape_cast %195 : vector<16x8xf32> to vector<1x16x8xf32>
        tpu.vector_store %arg19[%c3_152, %c0_153, %c0_154], %198 {strides = array<i32>} : memref<4x16x40xf32, #tpu.memory_space<vmem>>, vector<1x16x8xf32>,
      } else {
      }
    } else {
    }
    %c1_i32 = arith.constant 1 : i32
    %32 = arith.cmpi eq, %arg1, %c1_i32 : i32
    %33 = arith.extui %32 : i1 to i32
    %c0_i32_7 = arith.constant 0 : i32
    %34 = arith.cmpi ne, %33, %c0_i32_7 : i32
    scf.if %34 {
      %cst = arith.constant 0.000000e+00 : f32
      %35 = vector.broadcast %cst : f32 to vector<16x128xf32>
      %c0_8 = arith.constant 0 : index
      %c0_9 = arith.constant 0 : index
      %c0_10 = arith.constant 0 : index
      %36 = vector.load %arg19[%c0_8, %c0_9, %c0_10] : memref<4x16x40xf32, #tpu.memory_space<vmem>>, vector<1x16x40xf32>
      %37 = vector.shape_cast %36 : vector<1x16x40xf32> to vector<16x40xf32>
      %c0_11 = arith.constant 0 : index
      %c0_12 = arith.constant 0 : index
      %38 = vector.load %arg20[%c0_11, %c0_12] : memref<72x128xf32, #tpu.memory_space<vmem>>, vector<40x128xf32>
      %cst_13 = arith.constant dense<0.000000e+00> : vector<16x128xf32>
      %39 = tpu.matmul %37, %38, %cst_13 {dimension_numbers = #tpu.dot_dimension_numbers<[1], [0], [0], [1], [0, 0, 1, 1], [], []>} : vector<16x40xf32>, vector<40x128xf32>, vector<16x128xf32> -> vector<16x128xf32>
      %40 = arith.addf %35, %39 : vector<16x128xf32>
      %c1 = arith.constant 1 : index
      %c0_14 = arith.constant 0 : index
      %c0_15 = arith.constant 0 : index
      %41 = vector.load %arg19[%c1, %c0_14, %c0_15] : memref<4x16x40xf32, #tpu.memory_space<vmem>>, vector<1x16x16xf32>
      %42 = vector.shape_cast %41 : vector<1x16x16xf32> to vector<16x16xf32>
      %c40_16 = arith.constant 40 : index
      %c0_17 = arith.constant 0 : index
      %43 = vector.load %arg20[%c40_16, %c0_17] : memref<72x128xf32, #tpu.memory_space<vmem>>, vector<16x128xf32>
      %cst_18 = arith.constant dense<0.000000e+00> : vector<16x128xf32>
      %44 = tpu.matmul %42, %43, %cst_18 {dimension_numbers = #tpu.dot_dimension_numbers<[1], [0], [0], [1], [0, 0, 1, 1], [], []>} : vector<16x16xf32>, vector<16x128xf32>, vector<16x128xf32> -> vector<16x128xf32>
      %45 = arith.addf %40, %44 : vector<16x128xf32>
      %c2 = arith.constant 2 : index
      %c0_19 = arith.constant 0 : index
      %c0_20 = arith.constant 0 : index
      %46 = vector.load %arg19[%c2, %c0_19, %c0_20] : memref<4x16x40xf32, #tpu.memory_space<vmem>>, vector<1x16x8xf32>
      %47 = vector.shape_cast %46 : vector<1x16x8xf32> to vector<16x8xf32>
      %c56_21 = arith.constant 56 : index
      %c0_22 = arith.constant 0 : index
      %48 = vector.load %arg20[%c56_21, %c0_22] : memref<72x128xf32, #tpu.memory_space<vmem>>, vector<8x128xf32>
      %cst_23 = arith.constant dense<0.000000e+00> : vector<16x128xf32>
      %49 = tpu.matmul %47, %48, %cst_23 {dimension_numbers = #tpu.dot_dimension_numbers<[1], [0], [0], [1], [0, 0, 1, 1], [], []>} : vector<16x8xf32>, vector<8x128xf32>, vector<16x128xf32> -> vector<16x128xf32>
      %50 = arith.addf %45, %49 : vector<16x128xf32>
      %c3 = arith.constant 3 : index
      %c0_24 = arith.constant 0 : index
      %c0_25 = arith.constant 0 : index
      %51 = vector.load %arg19[%c3, %c0_24, %c0_25] : memref<4x16x40xf32, #tpu.memory_space<vmem>>, vector<1x16x8xf32>
      %52 = vector.shape_cast %51 : vector<1x16x8xf32> to vector<16x8xf32>
      %c64_26 = arith.constant 64 : index
      %c0_27 = arith.constant 0 : index
      %53 = vector.load %arg20[%c64_26, %c0_27] : memref<72x128xf32, #tpu.memory_space<vmem>>, vector<8x128xf32>
      %cst_28 = arith.constant dense<0.000000e+00> : vector<16x128xf32>
      %54 = tpu.matmul %52, %53, %cst_28 {dimension_numbers = #tpu.dot_dimension_numbers<[1], [0], [0], [1], [0, 0, 1, 1], [], []>} : vector<16x8xf32>, vector<8x128xf32>, vector<16x128xf32> -> vector<16x128xf32>
      %55 = arith.addf %50, %54 : vector<16x128xf32>
      %c0_29 = arith.constant 0 : index
      %c0_30 = arith.constant 0 : index
      %56 = vector.load %arg13[%c0_29, %c0_30] : memref<16x1xf32, #tpu.memory_space<vmem>>, vector<16x1xf32>
      %57 = vector.broadcast %56 : vector<16x1xf32> to vector<16x128xf32>
      %58 = arith.mulf %55, %57 : vector<16x128xf32>
      %c0_31 = arith.constant 0 : index
      %c0_32 = arith.constant 0 : index
      %59 = vector.load %arg14[%c0_31, %c0_32] : memref<16x1xf32, #tpu.memory_space<vmem>>, vector<16x1xf32>
      %60 = vector.broadcast %59 : vector<16x1xf32> to vector<16x128xf32>
      %61 = arith.addf %58, %60 : vector<16x128xf32>
      %cst_33 = arith.constant 0.000000e+00 : f32
      %62 = vector.broadcast %cst_33 : f32 to vector<16x128xf32>
      %63 = arith.maximumf %61, %62 : vector<16x128xf32>
      %c0_34 = arith.constant 0 : index
      %c0_35 = arith.constant 0 : index
      %64 = vector.load %arg15[%c0_34, %c0_35] : memref<4x16xf32, #tpu.memory_space<vmem>>, vector<4x16xf32>
      %cst_36 = arith.constant dense<0.000000e+00> : vector<4x128xf32>
      %65 = tpu.matmul %64, %63, %cst_36 {dimension_numbers = #tpu.dot_dimension_numbers<[1], [0], [0], [1], [0, 0, 1, 1], [], []>} : vector<4x16xf32>, vector<16x128xf32>, vector<4x128xf32> -> vector<4x128xf32>
      %66 = arith.negf %65 : vector<4x128xf32>
      %67 = math.exp %66 : vector<4x128xf32>
      %cst_37 = arith.constant 1.000000e+00 : f32
      %68 = vector.broadcast %cst_37 : f32 to vector<4x128xf32>
      %69 = arith.addf %68, %67 : vector<4x128xf32>
      %70 = arith.divf %68, %69 : vector<4x128xf32>
      %cst_38 = arith.constant 1.000000e+00 : f32
      %71 = vector.broadcast %cst_38 : f32 to vector<4x128xf32>
      %72 = arith.addf %70, %71 : vector<4x128xf32>
      %73 = arith.index_cast %arg2 : i32 to index
      %c0_39 = arith.constant 0 : index
      %c0_40 = arith.constant 0 : index
      %74 = vector.load %arg17[%73, %c0_39, %c0_40] : memref<5x16x128xf32, #tpu.memory_space<vmem>>, vector<1x16x128xf32>
      %75 = vector.shape_cast %74 : vector<1x16x128xf32> to vector<16x128xf32>
      %c0_41 = arith.constant 0 : index
      %c0_42 = arith.constant 0 : index
      %c0_43 = arith.constant 0 : index
      %76 = vector.load %arg18[%c0_41, %c0_42, %c0_43] : memref<4x16x40xf32, #tpu.memory_space<vmem>>, vector<1x16x40xf32>
      %77 = vector.shape_cast %76 : vector<1x16x40xf32> to vector<16x40xf32>
      %c0_44 = arith.constant 0 : index
      %c0_45 = arith.constant 0 : index
      %78 = vector.load %arg20[%c0_44, %c0_45] : memref<72x128xf32, #tpu.memory_space<vmem>>, vector<40x128xf32>
      %cst_46 = arith.constant dense<0.000000e+00> : vector<16x128xf32>
      %79 = tpu.matmul %77, %78, %cst_46 {dimension_numbers = #tpu.dot_dimension_numbers<[1], [0], [0], [1], [0, 0, 1, 1], [], []>} : vector<16x40xf32>, vector<40x128xf32>, vector<16x128xf32> -> vector<16x128xf32>
      %80 = vector.extract_strided_slice %72 {offsets = [0, 0], sizes = [1, 128], strides = [1, 1]} : vector<4x128xf32> to vector<1x128xf32>
      %81 = vector.broadcast %80 : vector<1x128xf32> to vector<16x128xf32>
      %82 = arith.mulf %79, %81 : vector<16x128xf32>
      %83 = arith.addf %75, %82 : vector<16x128xf32>
      %c1_47 = arith.constant 1 : index
      %c0_48 = arith.constant 0 : index
      %c0_49 = arith.constant 0 : index
      %84 = vector.load %arg18[%c1_47, %c0_48, %c0_49] : memref<4x16x40xf32, #tpu.memory_space<vmem>>, vector<1x16x16xf32>
      %85 = vector.shape_cast %84 : vector<1x16x16xf32> to vector<16x16xf32>
      %c40_50 = arith.constant 40 : index
      %c0_51 = arith.constant 0 : index
      %86 = vector.load %arg20[%c40_50, %c0_51] : memref<72x128xf32, #tpu.memory_space<vmem>>, vector<16x128xf32>
      %cst_52 = arith.constant dense<0.000000e+00> : vector<16x128xf32>
      %87 = tpu.matmul %85, %86, %cst_52 {dimension_numbers = #tpu.dot_dimension_numbers<[1], [0], [0], [1], [0, 0, 1, 1], [], []>} : vector<16x16xf32>, vector<16x128xf32>, vector<16x128xf32> -> vector<16x128xf32>
      %88 = vector.extract_strided_slice %72 {offsets = [1, 0], sizes = [1, 128], strides = [1, 1]} : vector<4x128xf32> to vector<1x128xf32>
      %89 = vector.broadcast %88 : vector<1x128xf32> to vector<16x128xf32>
      %90 = arith.mulf %87, %89 : vector<16x128xf32>
      %91 = arith.addf %83, %90 : vector<16x128xf32>
      %c2_53 = arith.constant 2 : index
      %c0_54 = arith.constant 0 : index
      %c0_55 = arith.constant 0 : index
      %92 = vector.load %arg18[%c2_53, %c0_54, %c0_55] : memref<4x16x40xf32, #tpu.memory_space<vmem>>, vector<1x16x8xf32>
      %93 = vector.shape_cast %92 : vector<1x16x8xf32> to vector<16x8xf32>
      %c56_56 = arith.constant 56 : index
      %c0_57 = arith.constant 0 : index
      %94 = vector.load %arg20[%c56_56, %c0_57] : memref<72x128xf32, #tpu.memory_space<vmem>>, vector<8x128xf32>
      %cst_58 = arith.constant dense<0.000000e+00> : vector<16x128xf32>
      %95 = tpu.matmul %93, %94, %cst_58 {dimension_numbers = #tpu.dot_dimension_numbers<[1], [0], [0], [1], [0, 0, 1, 1], [], []>} : vector<16x8xf32>, vector<8x128xf32>, vector<16x128xf32> -> vector<16x128xf32>
      %96 = vector.extract_strided_slice %72 {offsets = [2, 0], sizes = [1, 128], strides = [1, 1]} : vector<4x128xf32> to vector<1x128xf32>
      %97 = vector.broadcast %96 : vector<1x128xf32> to vector<16x128xf32>
      %98 = arith.mulf %95, %97 : vector<16x128xf32>
      %99 = arith.addf %91, %98 : vector<16x128xf32>
      %c3_59 = arith.constant 3 : index
      %c0_60 = arith.constant 0 : index
      %c0_61 = arith.constant 0 : index
      %100 = vector.load %arg18[%c3_59, %c0_60, %c0_61] : memref<4x16x40xf32, #tpu.memory_space<vmem>>, vector<1x16x8xf32>
      %101 = vector.shape_cast %100 : vector<1x16x8xf32> to vector<16x8xf32>
      %c64_62 = arith.constant 64 : index
      %c0_63 = arith.constant 0 : index
      %102 = vector.load %arg20[%c64_62, %c0_63] : memref<72x128xf32, #tpu.memory_space<vmem>>, vector<8x128xf32>
      %cst_64 = arith.constant dense<0.000000e+00> : vector<16x128xf32>
      %103 = tpu.matmul %101, %102, %cst_64 {dimension_numbers = #tpu.dot_dimension_numbers<[1], [0], [0], [1], [0, 0, 1, 1], [], []>} : vector<16x8xf32>, vector<8x128xf32>, vector<16x128xf32> -> vector<16x128xf32>
      %104 = vector.extract_strided_slice %72 {offsets = [3, 0], sizes = [1, 128], strides = [1, 1]} : vector<4x128xf32> to vector<1x128xf32>
      %105 = vector.broadcast %104 : vector<1x128xf32> to vector<16x128xf32>
      %106 = arith.mulf %103, %105 : vector<16x128xf32>
      %107 = arith.addf %99, %106 : vector<16x128xf32>
      %c0_65 = arith.constant 0 : index
      %c0_66 = arith.constant 0 : index
      %c0_67 = arith.constant 0 : index
      %108 = vector.load %arg16[%c0_65, %c0_66, %c0_67] : memref<1x16x128xf32, #tpu.memory_space<vmem>>, vector<1x16x128xf32>
      %109 = vector.shape_cast %108 : vector<1x16x128xf32> to vector<16x128xf32>
      %110 = vector.shape_cast %107 : vector<16x128xf32> to vector<1x16x128xf32>
      tpu.vector_store %arg16[%c0_65, %c0_66, %c0_67], %110 {strides = array<i32>} : memref<1x16x128xf32, #tpu.memory_space<vmem>>, vector<1x16x128xf32>,
    } else {
    }
    return
  }
  func.func @transform_0(%arg0: i32, %arg1: i32, %arg2: i32) -> (i32, i32, i32) {
    %c1_i32 = arith.constant 1 : i32
    %0 = arith.subi %c1_i32, %arg1 : i32
    %1 = arith.muli %arg2, %0 : i32
    %c0_i32 = arith.constant 0 : i32
    %c0_i32_0 = arith.constant 0 : i32
    return %arg0, %c0_i32, %1 : i32, i32, i32
  }
  func.func @transform_1(%arg0: i32, %arg1: i32, %arg2: i32) -> (i32, i32) {
    %c0_i32 = arith.constant 0 : i32
    %c0_i32_0 = arith.constant 0 : i32
    return %c0_i32, %arg2 : i32, i32
  }
  func.func @transform_2(%arg0: i32, %arg1: i32, %arg2: i32) -> (i32, i32) {
    %c0_i32 = arith.constant 0 : i32
    %c0_i32_0 = arith.constant 0 : i32
    %c0_i32_1 = arith.constant 0 : i32
    return %c0_i32, %c0_i32_0 : i32, i32
  }
  func.func @transform_3(%arg0: i32, %arg1: i32, %arg2: i32) -> (i32, i32) {
    %c0_i32 = arith.constant 0 : i32
    %c0_i32_0 = arith.constant 0 : i32
    %c0_i32_1 = arith.constant 0 : i32
    return %c0_i32, %c0_i32_0 : i32, i32
  }
  func.func @transform_4(%arg0: i32, %arg1: i32, %arg2: i32) -> (i32, i32) {
    %c0_i32 = arith.constant 0 : i32
    %c0_i32_0 = arith.constant 0 : i32
    %c0_i32_1 = arith.constant 0 : i32
    return %c0_i32, %c0_i32_0 : i32, i32
  }
  func.func @transform_5(%arg0: i32, %arg1: i32, %arg2: i32) -> (i32, i32, i32) {
    %c0_i32 = arith.constant 0 : i32
    %c0_i32_0 = arith.constant 0 : i32
    %c0_i32_1 = arith.constant 0 : i32
    %c0_i32_2 = arith.constant 0 : i32
    return %c0_i32, %c0_i32_0, %c0_i32_1 : i32, i32, i32
  }
  func.func @transform_6(%arg0: i32, %arg1: i32, %arg2: i32) -> (i32, i32, i32) {
    %c0_i32 = arith.constant 0 : i32
    %c0_i32_0 = arith.constant 0 : i32
    %c0_i32_1 = arith.constant 0 : i32
    %c0_i32_2 = arith.constant 0 : i32
    return %c0_i32, %c0_i32_0, %c0_i32_1 : i32, i32, i32
  }
  func.func @transform_7(%arg0: i32, %arg1: i32, %arg2: i32) -> (i32, i32, i32) {
    %c0_i32 = arith.constant 0 : i32
    %c0_i32_0 = arith.constant 0 : i32
    %c0_i32_1 = arith.constant 0 : i32
    %c0_i32_2 = arith.constant 0 : i32
    return %c0_i32, %c0_i32_0, %c0_i32_1 : i32, i32, i32
  }
  func.func @transform_8(%arg0: i32, %arg1: i32, %arg2: i32) -> (i32, i32, i32) {
    %c0_i32 = arith.constant 0 : i32
    %c0_i32_0 = arith.constant 0 : i32
    %c0_i32_1 = arith.constant 0 : i32
    %c0_i32_2 = arith.constant 0 : i32
    return %c0_i32, %c0_i32_0, %c0_i32_1 : i32, i32, i32
  }
  func.func @transform_9(%arg0: i32, %arg1: i32, %arg2: i32) -> (i32, i32, i32) {
    %c0_i32 = arith.constant 0 : i32
    %c0_i32_0 = arith.constant 0 : i32
    %c0_i32_1 = arith.constant 0 : i32
    %c0_i32_2 = arith.constant 0 : i32
    return %c0_i32, %c0_i32_0, %c0_i32_1 : i32, i32, i32
  }
  func.func @transform_10(%arg0: i32, %arg1: i32, %arg2: i32) -> (i32, i32) {
    %c0_i32 = arith.constant 0 : i32
    %c0_i32_0 = arith.constant 0 : i32
    %c0_i32_1 = arith.constant 0 : i32
    return %c0_i32, %c0_i32_0 : i32, i32
  }
  func.func @transform_11(%arg0: i32, %arg1: i32, %arg2: i32) -> (i32, i32) {
    %c0_i32 = arith.constant 0 : i32
    %c0_i32_0 = arith.constant 0 : i32
    %c0_i32_1 = arith.constant 0 : i32
    return %c0_i32, %c0_i32_0 : i32, i32
  }
  func.func @transform_12(%arg0: i32, %arg1: i32, %arg2: i32) -> (i32, i32) {
    %c0_i32 = arith.constant 0 : i32
    %c0_i32_0 = arith.constant 0 : i32
    %c0_i32_1 = arith.constant 0 : i32
    return %c0_i32, %c0_i32_0 : i32, i32
  }
  func.func @transform_13(%arg0: i32, %arg1: i32, %arg2: i32) -> (i32, i32, i32) {
    %0 = arith.muli %arg2, %arg1 : i32
    %c0_i32 = arith.constant 0 : i32
    %c0_i32_0 = arith.constant 0 : i32
    return %arg0, %c0_i32, %0 : i32, i32, i32
  }
}

</mosaic_0001>

<bundles_post_ra>
// kernel: tpu_custom_call.1
= control target key start
LH: loop header
LB: loop body
LE: loop exit
PB: predicated region body
PF: predicated region fallthrough
CT: control target
= control target key end

     0   :  { %s4055_s0 = inlined_call_operand.hbm [shape: f32[2,32,640], index: 0, kind: input, shape index: {}]   ;;  %s4056_s1 = inlined_call_operand.vmem [shape: s32[4,640], index: 1, kind: input, shape index: {}]   ;;  %s4057_s2 = inlined_call_operand.vmem [shape: f32[16,32], index: 2, kind: input, shape index: {}]   ;;  %s4058_s3 = inlined_call_operand.vmem [shape: f32[16,1], index: 3, kind: input, shape index: {}]   ;;  %s4059_s4 = inlined_call_operand.vmem [shape: f32[16,1], index: 4, kind: input, shape index: {}]   ;;  %s4060_s5 = inlined_call_operand.vmem [shape: f32[4,1,40], index: 5, kind: input, shape index: {}]   ;;  %s4061_s6 = inlined_call_operand.vmem [shape: f32[4,16,16], index: 6, kind: input, shape index: {}]   ;;  %s4062_s7 = inlined_call_operand.vmem [shape: f32[4,16,1], index: 7, kind: input, shape index: {}]   ;;  %s4063_s8 = inlined_call_operand.vmem [shape: f32[4,16,1], index: 8, kind: input, shape index: {}]   ;;  %s4064_s9 = inlined_call_operand.vmem [shape: f32[4,16,16], index: 9, kind: input, shape index: {}]   ;;  %s4065_s10 = inlined_call_operand.vmem [shape: f32[16,1], index: 10, kind: input, shape index: {}]   ;;  %s4066_s11 = inlined_call_operand.vmem [shape: f32[16,1], index: 11, kind: input, shape index: {}]   ;;  %s4067_s12 = inlined_call_operand.vmem [shape: f32[4,16], index: 12, kind: input, shape index: {}]   ;;  %s4068_s13 = inlined_call_operand.hbm [shape: f32[2,16,640], index: 13, kind: output, shape index: {}]  }
   0x1   :  { %4092 = sst [smem:[#allocation17_spill]] %s4055_s0 }
   0x2   :  { %4093 = sst [smem:[#allocation18_spill]] %s4056_s1 }
   0x3   :  { %4094 = sst [smem:[#allocation19_spill]] %s4057_s2 }
   0x4   :  { %4095 = sst [smem:[#allocation20_spill]] %s4058_s3 }
   0x5   :  { %4096 = sst [smem:[#allocation21_spill]] %s4059_s4 }
   0x6   :  { %4097 = sst [smem:[#allocation22_spill]] %s4060_s5 }
   0x7   :  { %4098 = sst [smem:[#allocation23_spill]] %s4061_s6 }
   0x8   :  { %4099 = sst [smem:[#allocation24_spill]] %s4062_s7 }
   0x9   :  { %4100 = sst [smem:[#allocation25_spill]] %s4063_s8 }
   0xa   :  { %4101 = sst [smem:[#allocation26_spill]] %s4064_s9 }
   0xb   :  { %4102 = sst [smem:[#allocation27_spill]] %s4065_s10 }
   0xc   :  { %4103 = sst [smem:[#allocation28_spill]] %s4066_s11 }
   0xd   :  { %4104 = sst [smem:[#allocation29_spill]] %s4067_s12 }
   0xe   :  { %4105 = sst [smem:[#allocation30_spill]] %s4068_s13 }
   0xf   :  { %18 = vsyncpa [#allocation7], 0 }
  0x10   :  { %20 = vsyncpa [#allocation7 + $0x1], 0 }
  0x11   :  { %21 = vsyncpa [#allocation8], 0 }
  0x12   :  { %23 = vsyncpa [#allocation8 + $0x1], 0  ;;  %s3506_s25 = smov 0   ;;  %s3508_s26 = smov 0  }
  0x13   :  { %s3510_s27 = smov 0   ;;  %s3512_s28 = smov 0  }
  0x14   :  { %s3514_s29 = smov 0   ;;  %s3516_s30 = smov 0  }
  0x15   :  { %s3518_s14 = smov 0   ;;  %s3520_s15 = smov 0  }
  0x16   :  { %s3522_s16 = smov 0   ;;  %s3524_s17 = smov 0  }
  0x17   :  { %s3526_s18 = smov 0   ;;  %s3528_s19 = smov 0  }
  0x18   :  { %s3530_s20 = smov 0  }
  0x19 LB: > { %4106 = sst [smem:[#allocation12_spill]] %s3399_s16  ;;  %s4072_s21 = sadd.s32 4294967295, %s3415_s20   ;;  %s3415_s20 = sphi %s3530_s20, %s29_s20   ;;  %s3411_s19 = sphi %s3528_s19, %s4152_s19   ;;  %s3407_s18 = sphi %s3526_s18, %s4151_s18   ;;  %s3403_s17 = sphi %s3524_s17, %s4150_s17   ;;  %s3399_s16 = sphi %s3522_s16, %s4149_s16   ;;  %s3395_s15 = sphi %s3520_s15, %s4140_s15   ;;  %s3391_s14 = sphi %s3518_s14, %s4139_s14   ;;  %s3387_s30 = sphi %s3516_s30, %s4148_s30   ;;  %s3383_s29 = sphi %s3514_s29, %s4147_s29   ;;  %s3379_s28 = sphi %s3512_s28, %s4146_s28   ;;  %s3375_s27 = sphi %s3510_s27, %s4145_s27   ;;  %s3371_s26 = sphi %s3508_s26, %s4144_s26   ;;  %s3367_s25 = sphi %s3506_s25, %s4143_s25  }
  0x1a   : > { %4107 = sst [smem:[#allocation13_spill]] %s3403_s17  ;;  %s41_s23 = sadd.s32 1, %s3403_s17 }
  0x1b   : > { %4108 = sst [smem:[#allocation14_spill]] %s3407_s18  ;;  %s44_s24 = sadd.s32 1, %s3407_s18 }
  0x1c   : > { %p42_p0 = scmp.ge.s32.totalorder %s41_s23, 5  ;;  %s48_s13 = sadd.s32 1, %s3411_s19 }
  0x1d   : > { %s52_s16 = ssub.s32 1, %s3407_s18  ;;  %s61_s12 = sadd.s32 1, %s3387_s30 }
  0x1e   : > { %s4154_s23 = smov (%p42_p0, %s41_s23), 0  ;;  %s4156_s24 = smov (!%p42_p0, %s44_s24), %s3407_s18 }
  0x1f   : > { %s3582_s11 = smul.u32 %s3403_s17, %s52_s16  ;;  %p68_p1 = scmp.ne.s32.totalorder %s3387_s30, %s3383_s29 }
  0x20   : > { %p46_p2 = scmp.ge.s32.totalorder %s4156_s24, 2  ;;  %p69_p3 = scmp.eq.s32.totalorder %s3415_s20, 0 }
  0x21   : > { %p74_p4 = scmp.ne.s32.totalorder %s3383_s29, %s3379_s28  ;;  %p75_p5 = scmp.eq.s32.totalorder %s4072_s21, 0 }
  0x22   : > { %s4158_s24 = smov (%p46_p2, %s4156_s24), 0  ;;  %s4160_s13 = smov (!%p46_p2, %s48_s13), %s3411_s19 }
  0x23   : > { %4109 = sst [smem:[#allocation15_spill]] %s4158_s24  ;;  %s54_s22 = ssub.s32 1, %s4158_s24 }
  0x24   : > { %p3595_p6 = por %p69_p3, %p68_p1  ;;  %p50_p7 = scmp.ge.s32.totalorder %s4160_s13, 2 }
  0x25   : > { %s55_s10 = smul.u32 %s54_s22, %s4154_s23  ;;  %p3600_p8 = por %p75_p5, %p74_p4 }
  0x26   : > { %s341_s21 = smul.u32 %s3403_s17, %s3407_s18  ;;  %s4162_s13 = smov (%p50_p7, %s4160_s13), 0 }
  0x27   : > { %4112 = sst [smem:[#allocation16_spill]] %s4162_s13  ;;  %s57_s9 = ssub.s32 %s3582_s11, %s55_s10 }
  0x28   : > { %s342_s7 = smul.u32 %s4158_s24, %s4154_s23  ;;  %s56_s8 = ssub.s32 %s3411_s19, %s4162_s13 }
  0x29   : > { %s348_s6 = sadd.s32 1, %s3375_s27  ;;  %s58_s5 = sor.u32 %s57_s9, %s56_s8 }
  0x2a   : > { %s344_s22 = ssub.s32 %s341_s21, %s342_s7  ;;  %p59_p9 = scmp.eq.s32.totalorder %s58_s5, 0 }
  0x2b   : > { %s345_s4 = sor.u32 %s344_s22, %s56_s8  ;;  %p358_p11 = scmp.ne.s32.totalorder %s3375_s27, %s3371_s26 }
  0x2c   : > { %p346_p10 = scmp.eq.s32.totalorder %s345_s4, 0  ;;  %s4113_s3 = sadd.s32 4294967295, %s3415_s20  }
  0x2d   : > { %s3617_s18 = scalar_select %p59_p9, %s3387_s30, %s61_s12  }
  0x2e   : > { %s3620_s17 = scalar_select %p346_p10, %s3375_s27, %s348_s6  }
  0x2f   : > { %p359_p12 = scmp.eq.s32.totalorder %s4113_s3, 19  ;;  %p364_p13 = scmp.ne.s32.totalorder %s3371_s26, %s3367_s25 }
  0x30   : > { %s4114_s10 = sadd.s32 4294967294, %s3415_s20   ;;  %p3114_p2 = scmp.lt.s32.totalorder %s3415_s20, 20 }
  0x31   : > { %p365_p0 = scmp.eq.s32.totalorder %s4114_s10, 19  ;;  %p3628_p1 = por %p359_p12, %p358_p11 }
  0x32   : > { %s418_s4 = sand.u32 1, %s3387_s30   ;;  %s3100_s8 = smul.u32 20, %s3411_s19 }
  0x33   : > { %s4115_s13 = scalar_select %p3628_p1, 1, 0 }
  0x34   : > { %p3633_p3 = por %p365_p0, %p364_p13  ;;  %s2678_s7 = sshll.u32 %s418_s4, 5 }
  0x35   : > { %s422_s9 = scalar_lea.vmem [#allocation6], %s2678_s7  ;;  %p3641_p4 = pnand %p3114_p2, %p3595_p6 }
  0x36   : > { %s4116_s5 = scalar_select %p3633_p3, 1, 0 }
  0x37   : > { %s432_s6 = sshll.u32 %s422_s9, 4  ;;  %s429_s12 = sadd.s32 %s3100_s8, %s3582_s11  ;;  %s3646_s6 = int_to_ptr.vmem [resolvable:$true] %s432_s6 }
  0x38   : > { %s2679_s21 = sshll.u32 %s429_s12, 7  ;;  %s4118_s0 = sld [smem:[#allocation17_spill]] }
  0x39   : > { %s3653_s16 = scalar_lea.sflag [#allocation7], %s418_s4  ;;  %p3249_p6 = pneg %p3641_p4 }
  0x3e   : > { %s3651_s24 = scalar_lea.hbm %s4118_s0, %s2679_s21  ;;  %s3252_s9 = scalar_lea.hbm %s4118_s0, 5120 }
  0x3f   : > { %s3247_s7 = scalar_lea.hbm %s3651_s24, 512  ;;  %p3253_p10 = scmp.lt.u32.totalorder %s3651_s24, %s4118_s0 }
  0x40   : > { %p3248_p5 = scmp.ne.s32.totalorder %s3651_s24, %s3247_s7  ;;  %p3254_p11 = scmp.lt.u32.totalorder %s3252_s9, %s3247_s7 }
  0x41   : > { %p3256_p13 = scmp.lt.u32.totalorder %s3247_s7, %s3651_s24 }
  0x42   : > { %p3250_p7 = pnand %p3249_p6, %p3248_p5  ;;  %p3255_p12 = por %p3254_p11, %p3253_p10 }
  0x44   : > { %p3251_p9 = pneg %p3250_p7  ;;  %p3257_p0 = por %p3256_p13, %p3255_p12 }
  0x46   : > { %p3258_p2 = pnand %p3257_p0, %p3251_p9 }
  0x48   : > { %3261 = shalt.err (!%p3258_p2)
}
  0x49   : > { %s3262_s4 = scalar_lea.vmem %s3646_s6, 512  ;;  %s3417_s22 = smov [#allocation6]  }
  0x4a   : > { %p3263_p5 = scmp.ne.s32.totalorder %s3646_s6, %s3262_s4  ;;  %s3267_s10 = sshll.u32 %s3417_s22, 4  ;;  %s3268_s10 = int_to_ptr.vmem [resolvable:$false] %s3267_s10 }
  0x4b   : > { %s3269_s11 = scalar_lea.vmem %s3268_s10, 1024  ;;  %p3270_p1 = scmp.lt.s32.totalorder %s3646_s6, %s3268_s10 }
  0x4c   : > { %p3265_p7 = pnand %p3263_p5, %p3249_p6  ;;  %p3271_p10 = scmp.lt.s32.totalorder %s3269_s11, %s3262_s4 }
  0x4e   : > { %p3266_p3 = pneg %p3265_p7  ;;  %p3272_p11 = por %p3271_p10, %p3270_p1 }
  0x50   : > { %p3273_p12 = pnand %p3272_p11, %p3266_p3 }
  0x52   : > { %3276 = shalt.err (!%p3273_p12)
}
  0x53   : > { %s3418_s7 = smov 640   ;;  %s3419_s8 = smov 128  }
  0x54   : > { %s3420_s9 = smov 8   ;;  %p2680_p6 = scmp.ge.s32.totalorder %s3415_s20, 1 }
  0x55   : > { %3109 = dma.hbm_to_vmem [thread:$0]  (!%p3641_p4), %s3651_s24, 512, %s3646_s6, %s3653_s16, %s3418_s7, %s3419_s8, %s3420_s9  }
  0x56   : > { %p447_p9 = scmp.lt.s32.totalorder %s3415_s20, 21 }
  0x58   : > { %p448_p13 = pnand %p2680_p6, %p447_p9 }
  0x59   : > { %s453_s12 = sand.u32 (!%p448_p13), 1, %s3383_s29  }
  0x5a   : > { %451 = sbr.rel (%p448_p13) target bundleno = 1669 (0x685), region = 72  ;;  %s2681_s21 = sshll.u32 (!%p448_p13), %s453_s12, 5 }
  0x5b   : > { %s454_s4 = scalar_lea.sflag (!%p448_p13), [#allocation7], %s453_s12  ;;  %s3684_s22 = scalar_lea.vmem (!%p448_p13), [#allocation6], %s2681_s21 }
  0x61   : > { %3358 = dma.done.wait (%p3600_p8), %s454_s4, 512  }
  0x62   : > { %3360 = vsyncadd (%p3600_p8), %s454_s4, 4294966784  ;;  %s4085_s24 = sand.u32 1, %s3371_s26   ;;  %p506_p1 = scmp.lt.s32.totalorder %s3391_s14, 4  ;;  %v512_v0 = vlaneseq  ;;  %v3421_v15 = vmov 0.0  }
  0x63   : > { %s3694_s6 = sshll.u32 %s4085_s24, 4  ;;  %s4119_s1 = sld [smem:[#allocation18_spill]] }
  0x64   : > { %v3696_v1 = vshrl.u32 %v512_v0, 7  ;;  %s507_s3 = scalar_select %p506_p1, %s3391_s14, 4 }
  0x65   : > { %s3723_s7 = scalar_lea.vmem [#allocation9], %s3694_s6  ;;  %p2693_p8 = scmp.ne.s32.totalorder %s3395_s15, 0 }
  0x66   : > { %v520_v2 = vsub.s32 0, %v3696_v1  ;;  %s2683_s16 = sshll.u32 %s507_s3, 2  ;;  %v544_v3 = vsub.s32 1, %v3696_v1  ;;  %v556_v4 = vsub.s32 2, %v3696_v1  ;;  %v564_v5 = vsub.s32 3, %v3696_v1  ;;  %v576_v25 = vld [vmem:[%s3684_s22] sm:$0xff] (!%p2693_p8) }
  0x67   : > { %v514_v6 = vadd.s32 8, %v3696_v1  ;;  %v515_v7 = vadd.s32 16, %v3696_v1  ;;  %v516_v8 = vadd.s32 24, %v3696_v1  ;;  %v517_v11 = vadd.s32 32, %v3696_v1  ;;  %v577_v26 = vld [vmem:[%s3684_s22 + $0x8] sm:$0xff] (!%p2693_p8)  ;;  %v578_v27 = vld [vmem:[%s3684_s22 + $0x10] sm:$0xff] (!%p2693_p8) }
  0x68   : > { %vm580_vm9 = vcmask (!%p2693_p8), 261120   ;;  %v3011_v28 = vpack.c.bf16 (!%p2693_p8), %v577_v26, %v576_v25  ;;  %v579_v29 = vld [vmem:[%s3684_s22 + $0x18] sm:$0xff] (!%p2693_p8)  ;;  %s4120_s2 = sld [smem:[#allocation19_spill]] (!%p2693_p8)  ;;  %v3422_v31 = vmov (!%p2693_p8), 0   ;;  %s4121_s4 = sld [smem:[#allocation20_spill]] (!%p2693_p8) }
  0x69   : > { %s509_s11 = scalar_lea.vmem %s4119_s1, %s2683_s16  ;;  %3237 = vset.pattern.permute.xlu0 (!%p2693_p8), %v3422_v31  ;;  %3238 = vset.pattern.permute.xlu1 (!%p2693_p8), %v3422_v31  ;;  %v3015_v32 = vpack.c.bf16 (!%p2693_p8), %v579_v29, %v578_v27  ;;  %s4122_s16 = sld [smem:[#allocation21_spill]] (!%p2693_p8) }
  0x6a   : > { %v511_v9 = vld [vmem:[%s509_s11] sm:$0xf]  ;;  %3012 = vmatprep.subr.bf16.mxu0 (!%p2693_p8), %v3011_v28  ;;  %s2696_s21 = sshll.u32 (!%p2693_p8), %s3391_s14, 4  ;;  %p2697_p3 = scmp.ne.s32.totalorder (!%p2693_p8), %s3391_s14, 0 }
  0x6b   : > { %v521_v10 = vrot.slane %v511_v9, %v520_v2  ;;  %v545_v12 = vrot.slane %v511_v9, %v544_v3  ;;  %v557_v13 = vrot.slane %v511_v9, %v556_v4  ;;  %v565_v14 = vrot.slane %v511_v9, %v564_v5  ;;  %3014 = vmatpush3.bf16.msra.mxu0 (!%p2693_p8), %v3011_v28  ;;  %s693_s6 = scalar_lea.vmem (!%p2693_p8), [#allocation2], %s2696_s21 }
  0x6c   : > { %3016 = vmatprep.subr.bf16.mxu0 (!%p2693_p8), %v3015_v32 }
  0x6d   : > { %vm522_vm0 = vcmp.eq.s32.totalorder %v3696_v1, %v521_v10  ;;  %vm523_vm1 = vcmp.eq.s32.totalorder %v514_v6, %v521_v10  ;;  %vm524_vm2 = vcmp.eq.s32.totalorder %v515_v7, %v521_v10  ;;  %vm525_vm3 = vcmp.eq.s32.totalorder %v516_v8, %v521_v10  ;;  %573 = sbr.rel (%p2693_p8) target bundleno = 1134 (0x46e), region = 80 }
  0x6e   : > { %v2684_v16 = vsel %vm522_vm0, 1.0, %v3421_v15  ;;  %v2685_v17 = vsel %vm523_vm1, 1.0, %v3421_v15  ;;  %v2686_v18 = vsel %vm524_vm2, 1.0, %v3421_v15  ;;  %v2687_v19 = vsel %vm525_vm3, 1.0, %v3421_v15  ;;  %v574_v30 = vld [vmem:[%s4120_s2] sm:$0xff] (!%p2693_p8)  ;;  %v663_v37 = vld [vmem:[%s4121_s4 + $0x8] sm:$0xff] (!%p2693_p8) }
  0x6f   : > { %537 = vst [vmem:[#allocation5] sm:$0xff] %v2684_v16  ;;  %538 = vst [vmem:[#allocation5 + $0x8] sm:$0xff] %v2685_v17  ;;  %vm526_vm4 = vcmp.eq.s32.totalorder %v517_v11, %v521_v10  ;;  %vm546_vm5 = vcmp.eq.s32.totalorder %v3696_v1, %v545_v12  ;;  %vm547_vm6 = vcmp.eq.s32.totalorder %v514_v6, %v545_v12  ;;  %2864 = vmatprep.mubr.msk.f32.mxu0 (!%p2693_p8), %vm580_vm9, %v574_v30  ;;  %v662_v33 = vld [vmem:[%s4121_s4] sm:$0xff] (!%p2693_p8)  ;;  %s4123_s10 = smov (!%p2693_p8), %s4122_s16  ;;  %v575_v43 = vld [vmem:[%s4120_s2 + $0x8] sm:$0xff] (!%p2693_p8) }
  0x70   : > { %539 = vst [vmem:[#allocation5 + $0x10] sm:$0xff] %v2686_v18  ;;  %540 = vst [vmem:[#allocation5 + $0x18] sm:$0xff] %v2687_v19  ;;  %vm558_vm7 = vcmp.eq.s32.totalorder %v3696_v1, %v557_v13  ;;  %v2688_v20 = vsel %vm526_vm4, 1.0, %v3421_v15  ;;  %v2689_v21 = vsel %vm546_vm5, 1.0, %v3421_v15  ;;  %v2690_v22 = vsel %vm547_vm6, 1.0, %v3421_v15  ;;  %v676_v34 = vld [vmem:[%s4122_s16] sm:$0xff] (!%p2693_p8)  ;;  %666 = vperm.xlu0 (!%p2693_p8), %3237, %v662_v33   ;;  %3018 = vmatpush3.bf16.msra.mxu0 (!%p2693_p8), %v3015_v32 }
  0x71   : > { %v2691_v23 = vsel %vm558_vm7, 1.0, %v3421_v15  ;;  %541 = vst [vmem:[#allocation5 + $0x20] sm:$0xff] %v2688_v20  ;;  %552 = vst [vmem:[#allocation5 + $0x28] sm:$0xff] %v2689_v21  ;;  %vm566_vm8 = vcmp.eq.s32.totalorder %v3696_v1, %v565_v14  ;;  %680 = vperm.xlu1 (!%p2693_p8), %3238, %v676_v34   ;;  %v677_v41 = vld [vmem:[%s4123_s10 + $0x8] sm:$0xff] (!%p2693_p8) }
  0x72   : > { %553 = vst [vmem:[#allocation5 + $0x30] sm:$0xff] %v2690_v22  ;;  %561 = vst [vmem:[#allocation5 + $0x38] sm:$0xff] %v2691_v23  ;;  %v2692_v24 = vsel %vm566_vm8, 1.0, %v3421_v15 }
  0x73   : > { %569 = vst [vmem:[#allocation5 + $0x40] sm:$0xff] %v2692_v24  ;;  %2865 = vmatmul.mubr.msk.f32.vlgmr.msra.gmra.mrb[0].mxu0 (!%p2693_p8), %vm580_vm9, %v575_v43 }
  0x74   : > { %671 = vperm.xlu0 %3237, %v663_v37   ;;  %vm784_vm10 = vcmask (!%p2697_p3), 326656   ;;  %v3423_v6 = vmov (!%p2697_p3), 0.0  }
  0x75   : > { %685 = vperm.xlu1 %3238, %v677_v41   ;;  %785 = vst.msk [vmem:[#allocation3] sm:$0xff] (!%p2697_p3), %vm784_vm10, %v3423_v6  ;;  %786 = vst.msk [vmem:[#allocation3 + $0x8] sm:$0xff] (!%p2697_p3), %vm784_vm10, %v3423_v6 }
  0x76   : > { %v696_v35 = vld [vmem:[#allocation5] sm:$0xff]  ;;  %v697_v36 = vld [vmem:[#allocation5 + $0x8] sm:$0xff]  ;;  %787 = vst.msk [vmem:[#allocation3 + $0x10] sm:$0xff] (!%p2697_p3), %vm784_vm10, %v3423_v6  ;;  %788 = vst.msk [vmem:[#allocation3 + $0x18] sm:$0xff] (!%p2697_p3), %vm784_vm10, %v3423_v6 }
  0x77   : > { %v3019_v38 = vpack.c.bf16 %v697_v36, %v696_v35  ;;  %v698_v39 = vld [vmem:[#allocation5 + $0x10] sm:$0xff]  ;;  %v699_v40 = vld [vmem:[#allocation5 + $0x18] sm:$0xff]  ;;  %789 = vst.msk [vmem:[#allocation3 + $0x20] sm:$0xff] (!%p2697_p3), %vm784_vm10, %v3423_v6  ;;  %790 = vst.msk [vmem:[#allocation3 + $0x28] sm:$0xff] (!%p2697_p3), %vm784_vm10, %v3423_v6 }
  0x78   : > { %v3023_v42 = vpack.c.bf16 %v699_v40, %v698_v39  ;;  %v700_v44 = vld [vmem:[#allocation5 + $0x20] sm:$0xff]  ;;  %v701_v45 = vld [vmem:[#allocation5 + $0x28] sm:$0xff]  ;;  %791 = vst.msk [vmem:[#allocation3 + $0x30] sm:$0xff] (!%p2697_p3), %vm784_vm10, %v3423_v6  ;;  %792 = vst.msk [vmem:[#allocation3 + $0x38] sm:$0xff] (!%p2697_p3), %vm784_vm10, %v3423_v6 }
  0x79   : > { %3020 = vmatprep.subr.bf16.mxu1 %v3019_v38  ;;  %v3027_v46 = vpack.c.bf16 %v701_v45, %v700_v44  ;;  %v702_v47 = vld [vmem:[#allocation5 + $0x30] sm:$0xff]  ;;  %v703_v48 = vld [vmem:[#allocation5 + $0x38] sm:$0xff] }
  0x7a   : > { %3022 = vmatpush3.bf16.xpose.msra.mxu1 %v3019_v38  ;;  %v3031_v49 = vpack.c.bf16 %v703_v48, %v702_v47  ;;  %v704_v50 = vld [vmem:[#allocation5 + $0x40] sm:$0xff] }
  0x7b   : > { %3024 = vmatprep.subr.bf16.mxu1 %v3023_v42 }
  0x82   : > { %3026 = vmatpush3.bf16.xpose.msra.mxu1 %v3023_v42 }
  0x83   : > { %3028 = vmatprep.subr.bf16.mxu1 %v3027_v46 }
  0x8a   : > { %3030 = vmatpush3.bf16.xpose.msra.mxu1 %v3027_v46 }
  0x8b   : > { %3032 = vmatprep.subr.bf16.mxu1 %v3031_v49 }
  0x92   : > { %3034 = vmatpush3.bf16.xpose.msra.mxu1 %v3031_v49 }
  0x93   : > { %2883 = vmatprep.subr.mxu1 %v704_v50 }
  0x9a   : > { %2884 = vmatpush3.xpose.msra.mxu1 %v704_v50 }
  0xef   : > { %v667_v51 = vpop.permute.xlu0 %666 }
  0xf0   : > { %v681_v52 = vpop.permute.xlu1 %680 }
  0xf3   : > { %v672_v53 = vpop.permute.xlu0 %671 }
  0xf4   : > { %v686_v57 = vpop.permute.xlu1 %685 }
 0x146   : > { %v2866_v54 = vpop.f32.mrb[0].mxu0 }
 0x147   : > { %v675_v55 = vmul.f32 %v2866_v54, %v672_v53  ;;  %v653_v56 = vpop.f32.mrb[1].mxu0 }
 0x148   : > { %v674_v58 = vmul.f32 %v667_v51, %v653_v56 }
 0x149   : > { %v689_v59 = vadd.f32 %v686_v57, %v675_v55 }
 0x14a   : > { %v688_v60 = vadd.f32 %v681_v52, %v674_v58 }
 0x14b   : > { %v691_v61 = vmax.f32 %v689_v59, 0.0 }
 0x14c   : > { %v690_v62 = vmax.f32 %v688_v60, 0.0 }
 0x14d   : > { %695 = vst [vmem:[%s693_s6 + $0x8] sm:$0xff] %v691_v61 }
 0x14e   : > { %694 = vst [vmem:[%s693_s6] sm:$0xff] %v690_v62  ;;  %2885 = vmatprep.mubr.f32.mxu1 %v690_v62 }
 0x14f   : > { %2886 = vmatmul.mubr.f32.vlgmr.msra.gmra.mrb[0].mxu1 %v691_v61 }
 0x21d   : > { %783 = sbr.rel (%p2697_p3) target bundleno = 548 (0x224), region = 84 }
 0x222   : > { %v2887_v63 = vpop.f32.mrb[0].mxu1 }
 0x223   : > { %v771_v0 = vpop.f32.mrb[1].mxu1 }
 0x224 PF: > { %s3424_s3 = smov 72   ;;  %s3425_s16 = smov 88   ;;  %v793_v7 = vld [vmem:[#allocation3] sm:$0xff]  ;;  %v794_v8 = vld [vmem:[#allocation3 + $0x8] sm:$0xff]  ;;  %vm797_vm11 = vcmask 326656   ;;  %v801_v12 = vld [vmem:[#allocation3 + $0x10] sm:$0xff] }
 0x225   : > { %819 = vrot.lane.b32.xlu1 %v771_v0, %s3424_s3  ;;  %805 = vrot.lane.b32.xlu0 %v771_v0, %s3425_s16  ;;  %v795_v9 = vadd.f32 %v793_v7, %v771_v0  ;;  %v796_v10 = vadd.f32 %v2887_v63, %v794_v8  ;;  %s3426_s22 = smov 64   ;;  %v817_v11 = vld [vmem:[#allocation3 + $0x20] sm:$0xff]  ;;  %vm827_vm12 = vcmask 64512   ;;  %vm813_vm13 = vcmask 130048   ;;  %v818_v17 = vld [vmem:[#allocation3 + $0x28] sm:$0xff]  ;;  %v802_v18 = vld [vmem:[#allocation3 + $0x18] sm:$0xff] }
 0x226   : > { %v832_v23 = vld [vmem:[#allocation3 + $0x38] sm:$0xff]  ;;  %v831_v24 = vld [vmem:[#allocation3 + $0x30] sm:$0xff]  ;;  %p2698_p4 = scmp.ne.s32.totalorder %s3391_s14, 4 }
 0x227   : > { %798 = vst.msk [vmem:[#allocation3] sm:$0xff] %vm797_vm11, %v795_v9  ;;  %799 = vst.msk [vmem:[#allocation3 + $0x8] sm:$0xff] %vm797_vm11, %v796_v10  ;;  %s4124_s8 = sld [smem:[#allocation22_spill]] (!%p2698_p4)  ;;  %s4125_s21 = sld [smem:[#allocation23_spill]] (!%p2698_p4)  ;;  %v3427_v36 = vmov (!%p2698_p4), 0  }
 0x228   : > { %3240 = vset.pattern.permute.xlu1 (!%p2698_p4), %v3427_v36  ;;  %3239 = vset.pattern.permute.xlu0 (!%p2698_p4), %v3427_v36  ;;  %s4126_s24 = sld [smem:[#allocation25_spill]] (!%p2698_p4)  ;;  %s4127_s0 = sld [smem:[#allocation24_spill]] (!%p2698_p4) }
 0x229   : > { %821 = vrot.lane.b32.xlu1 %v2887_v63, %s3424_s3  ;;  %807 = vrot.lane.b32.xlu0 %v2887_v63, %s3425_s16  ;;  %s4128_s28 = sld [smem:[#allocation26_spill]] (!%p2698_p4) }
 0x22d   : > { %835 = vrot.lane.b32.xlu1 %v2887_v63, %s3426_s22  ;;  %833 = vrot.lane.b32.xlu0 %v771_v0, %s3426_s22  ;;  %v2699_v31 = vld [vmem:[%s4124_s8] ss:$0 sm:$0xff] (!%p2698_p4)  ;;  %v2705_v38 = vld [vmem:[%s4124_s8 + $0x1] ss:$0 sm:$0xff] (!%p2698_p4) }
 0x22e   : > { %v847_v29 = vld [vmem:[#allocation3] sm:$0xff] (!%p2698_p4)  ;;  %v848_v30 = vld [vmem:[#allocation3 + $0x8] sm:$0xff] (!%p2698_p4)  ;;  %v858_v34 = vld [vmem:[%s4125_s21] sm:$0xff] (!%p2698_p4) }
 0x22f   : > { %v856_v32 = vmul.f32 (!%p2698_p4), %v2699_v31, %v847_v29  ;;  %v857_v33 = vmul.f32 (!%p2698_p4), %v2699_v31, %v848_v30  ;;  %2892 = vmatprep.mubr.msk.f32.mxu0 (!%p2698_p4), %vm813_vm13, %v858_v34  ;;  %v2719_v44 = vld [vmem:[%s4124_s8 + $0x2] ss:$0 sm:$0xff] (!%p2698_p4)  ;;  %v2733_v50 = vld [vmem:[%s4124_s8 + $0x3] ss:$0 sm:$0xff] (!%p2698_p4)  ;;  %v859_v51 = vld [vmem:[%s4125_s21 + $0x8] sm:$0xff] (!%p2698_p4)  ;;  %s4129_s11 = smov (!%p2698_p4), %s4128_s28 }
 0x230   : > { %v955_v52 = vld [vmem:[%s4126_s24] sm:$0xff] (!%p2698_p4)  ;;  %v2706_v53 = vld [vmem:[%s4125_s21 + $0x10] sm:$0xff] (!%p2698_p4)  ;;  %v956_v58 = vld [vmem:[%s4126_s24 + $0x8] sm:$0xff] (!%p2698_p4) }
 0x231   : > { %v3035_v39 = vpack.c.bf16 (!%p2698_p4), %v857_v33, %v856_v32  ;;  %959 = vperm.xlu1 (!%p2698_p4), %3240, %v955_v52   ;;  %v941_v57 = vld [vmem:[%s4127_s0] sm:$0xff] (!%p2698_p4)  ;;  %v942_v59 = vld [vmem:[%s4127_s0 + $0x8] sm:$0xff] (!%p2698_p4)  ;;  %v2707_v60 = vld [vmem:[%s4125_s21 + $0x18] sm:$0xff] (!%p2698_p4) }
 0x232   : > { %945 = vperm.xlu0 (!%p2698_p4), %3239, %v941_v57   ;;  %v2720_v61 = vld [vmem:[%s4125_s21 + $0x20] sm:$0xff] (!%p2698_p4)  ;;  %v2711_v63 = vld [vmem:[%s4127_s0 + $0x18] sm:$0xff] (!%p2698_p4)  ;;  %v2710_v0 = vld [vmem:[%s4127_s0 + $0x10] sm:$0xff] (!%p2698_p4) }
 0x233   : > { %3036 = vmatprep.subr.bf16.mxu0 (!%p2698_p4), %v3035_v39  ;;  %v2721_v6 = vld [vmem:[%s4125_s21 + $0x28] sm:$0xff] (!%p2698_p4)  ;;  %v2734_v7 = vld [vmem:[%s4125_s21 + $0x30] sm:$0xff] (!%p2698_p4)  ;;  %v2713_v8 = vld [vmem:[%s4126_s24 + $0x18] sm:$0xff] (!%p2698_p4) }
 0x234   : > { %3038 = vmatpush3.bf16.msra.mxu0 (!%p2698_p4), %v3035_v39  ;;  %v2712_v9 = vld [vmem:[%s4126_s24 + $0x10] sm:$0xff] (!%p2698_p4)  ;;  %v2735_v10 = vld [vmem:[%s4125_s21 + $0x38] sm:$0xff] (!%p2698_p4) }
 0x235   : > { %964 = vperm.xlu1 (!%p2698_p4), %3240, %v956_v58  }
 0x236   : > { %950 = vperm.xlu0 (!%p2698_p4), %3239, %v942_v59  }
 0x237   : > { %2893 = vmatmul.mubr.msk.f32.vlgmr.msra.gmra.mrb[0].mxu0 (!%p2698_p4), %vm813_vm13, %v859_v51 }
 0x238   : > { %2906 = vmatprep.mubr.msk.f32.mxu0 (!%p2698_p4), %vm813_vm13, %v2706_v53 }
 0x239   : > { %1164 = vperm.xlu1 (!%p2698_p4), %3240, %v2711_v63  }
 0x23a   : > { %1159 = vperm.xlu0 (!%p2698_p4), %3239, %v2710_v0  }
 0x23d   : > { %1179 = vperm.xlu1 (!%p2698_p4), %3240, %v2713_v8  }
 0x23e   : > { %1174 = vperm.xlu0 (!%p2698_p4), %3239, %v2712_v9  }
 0x297   : > { %v820_v13 = vpop.permute.xlu1 %819  ;;  %v806_v14 = vpop.permute.xlu0 %805 }
 0x298   : > { %v825_v15 = vadd.f32 %v820_v13, %v817_v11  ;;  %v811_v16 = vadd.f32 %v806_v14, %v801_v12  ;;  %v2725_v11 = vld [vmem:[%s4127_s0 + $0x28] sm:$0xff] (!%p2698_p4)  ;;  %v2724_v12 = vld [vmem:[%s4127_s0 + $0x20] sm:$0xff] (!%p2698_p4) }
 0x299   : > { %1381 = vperm.xlu1 (!%p2698_p4), %3240, %v2725_v11   ;;  %1376 = vperm.xlu0 (!%p2698_p4), %3239, %v2724_v12   ;;  %v2727_v13 = vld [vmem:[%s4126_s24 + $0x28] sm:$0xff] (!%p2698_p4)  ;;  %v2726_v14 = vld [vmem:[%s4126_s24 + $0x20] sm:$0xff] (!%p2698_p4) }
 0x29a   : > { %828 = vst.msk [vmem:[#allocation3 + $0x20] sm:$0xff] %vm827_vm12, %v825_v15  ;;  %v2739_v15 = vld [vmem:[%s4127_s0 + $0x38] sm:$0xff] (!%p2698_p4) }
 0x29b   : > { %814 = vst.msk [vmem:[#allocation3 + $0x10] sm:$0xff] %vm813_vm13, %v811_v16  ;;  %v822_v19 = vpop.permute.xlu1 %821  ;;  %v808_v20 = vpop.permute.xlu0 %807  ;;  %v2738_v16 = vld [vmem:[%s4127_s0 + $0x30] sm:$0xff] (!%p2698_p4) }
 0x29c   : > { %v826_v21 = vadd.f32 %v822_v19, %v818_v17  ;;  %v812_v22 = vadd.f32 %v808_v20, %v802_v18  ;;  %846 = sbr.rel (%p2698_p4) target bundleno = 1134 (0x46e), region = 88  ;;  %v2741_v17 = vld [vmem:[%s4126_s24 + $0x38] sm:$0xff] (!%p2698_p4)  ;;  %v2740_v18 = vld [vmem:[%s4126_s24 + $0x30] sm:$0xff] (!%p2698_p4)  ;;  %v973_v19 = vld [vmem:[%s4128_s28] sm:$0xff] (!%p2698_p4) }
 0x29d   : > { %1396 = vperm.xlu1 (!%p2698_p4), %3240, %v2727_v13   ;;  %1391 = vperm.xlu0 (!%p2698_p4), %3239, %v2726_v14   ;;  %v2728_v13 = vld [vmem:[%s4129_s11 + $0x20] sm:$0xff] (!%p2698_p4) }
 0x29e   : > { %829 = vst.msk [vmem:[#allocation3 + $0x28] sm:$0xff] %vm827_vm12, %v826_v21  ;;  %2899 = vmatprep.mubr.msk.f32.mxu1 (!%p2698_p4), %vm813_vm13, %v973_v19  ;;  %v2743_v19 = vld [vmem:[%s4129_s11 + $0x38] sm:$0xff] (!%p2698_p4) }
 0x29f   : > { %815 = vst.msk [vmem:[#allocation3 + $0x18] sm:$0xff] %vm813_vm13, %v812_v22  ;;  %v836_v25 = vpop.permute.xlu1 %835  ;;  %v834_v26 = vpop.permute.xlu0 %833 }
 0x2a0   : > { %v840_v27 = vadd.f32 %v836_v25, %v832_v23  ;;  %v839_v28 = vadd.f32 %v834_v26, %v831_v24 }
 0x2a1   : > { %v1275_v42 = vld [vmem:[#allocation3 + $0x20] sm:$0xff] (!%p2698_p4)  ;;  %1598 = vperm.xlu1 (!%p2698_p4), %3240, %v2739_v15   ;;  %1593 = vperm.xlu0 (!%p2698_p4), %3239, %v2738_v16   ;;  %v2729_v16 = vld [vmem:[%s4129_s11 + $0x28] sm:$0xff] (!%p2698_p4) }
 0x2a2   : > { %842 = vst.msk [vmem:[#allocation3 + $0x38] sm:$0xff] %vm827_vm12, %v840_v27  ;;  %841 = vst.msk [vmem:[#allocation3 + $0x30] sm:$0xff] %vm827_vm12, %v839_v28  ;;  %v1058_v35 = vld [vmem:[#allocation3 + $0x10] sm:$0xff] (!%p2698_p4)  ;;  %v1285_v46 = vmul.f32 (!%p2698_p4), %v2719_v44, %v1275_v42 }
 0x2a3   : > { %v1068_v40 = vmul.f32 %v2705_v38, %v1058_v35 }
 0x2a5   : > { %v1276_v43 = vld [vmem:[#allocation3 + $0x28] sm:$0xff]  ;;  %1613 = vperm.xlu1 %3240, %v2741_v17   ;;  %1608 = vperm.xlu0 %3239, %v2740_v18   ;;  %v2742_v18 = vld [vmem:[%s4129_s11 + $0x30] sm:$0xff] }
 0x2a6   : > { %v1059_v37 = vld [vmem:[#allocation3 + $0x18] sm:$0xff]  ;;  %v1286_v47 = vmul.f32 %v2719_v44, %v1276_v43 }
 0x2a7   : > { %v1069_v41 = vmul.f32 %v2705_v38, %v1059_v37 }
 0x2a8   : > { %v3051_v54 = vpack.c.bf16 %v1286_v47, %v1285_v46 }
 0x2a9   : > { %v3043_v45 = vpack.c.bf16 %v1069_v41, %v1068_v40  ;;  %v1492_v48 = vld [vmem:[#allocation3 + $0x30] sm:$0xff]  ;;  %v1493_v49 = vld [vmem:[#allocation3 + $0x38] sm:$0xff] }
 0x2aa   : > { %v1502_v55 = vmul.f32 %v2733_v50, %v1492_v48  ;;  %v1503_v56 = vmul.f32 %v2733_v50, %v1493_v49 }
 0x2ab   : > { %3044 = vmatprep.subr.bf16.mxu0 %v3043_v45 }
 0x2ac   : > { %3046 = vmatpush3.bf16.msra.mxu0 %v3043_v45  ;;  %v3059_v62 = vpack.c.bf16 %v1503_v56, %v1502_v55  ;;  %v974_v56 = vld [vmem:[%s4129_s11 + $0x8] sm:$0xff] }
 0x2ad   : > { %3052 = vmatprep.subr.bf16.mxu0 %v3051_v54 }
 0x2af   : > { %2907 = vmatmul.mubr.msk.f32.vlgmr.msra.gmra.mrb[2].mxu0 %vm813_vm13, %v2707_v60  ;;  %v2714_v60 = vld [vmem:[%s4129_s11 + $0x10] sm:$0xff] }
 0x2b0   : > { %3054 = vmatpush3.bf16.msra.mxu0 %v3051_v54  ;;  %2920 = vmatprep.mubr.msk.f32.mxu0 %vm813_vm13, %v2720_v61  ;;  %v960_v20 = vpop.permute.xlu1 %959 }
 0x2b1   : > { %3060 = vmatprep.subr.bf16.mxu0 %v3059_v62  ;;  %v946_v21 = vpop.permute.xlu0 %945 }
 0x2b3   : > { %2921 = vmatmul.mubr.msk.f32.vlgmr.msra.gmra.mrb[4].mxu0 %vm813_vm13, %v2721_v6 }
 0x2b4   : > { %3062 = vmatpush3.bf16.msra.mxu0 %v3059_v62  ;;  %2934 = vmatprep.mubr.msk.f32.mxu0 %vm813_vm13, %v2734_v7  ;;  %v965_v22 = vpop.permute.xlu1 %964 }
 0x2b5   : > { %v951_v23 = vpop.permute.xlu0 %950 }
 0x2b7   : > { %2935 = vmatmul.mubr.msk.f32.vlgmr.msra.gmra.mrb[6].mxu0 %vm813_vm13, %v2735_v10  ;;  %v2715_v10 = vld [vmem:[%s4129_s11 + $0x18] sm:$0xff] }
 0x2b8   : > { %v1165_v24 = vpop.permute.xlu1 %1164 }
 0x2b9   : > { %v1160_v25 = vpop.permute.xlu0 %1159 }
 0x2bc   : > { %v1180_v26 = vpop.permute.xlu1 %1179 }
 0x2bd   : > { %v1175_v27 = vpop.permute.xlu0 %1174 }
 0x30a   : > { %v2894_v30 = vpop.f32.mrb[0].mxu0 }
 0x30b   : > { %v954_v31 = vmul.f32 %v2894_v30, %v951_v23  ;;  %v932_v32 = vpop.f32.mrb[1].mxu0 }
 0x30c   : > { %v953_v34 = vmul.f32 %v946_v21, %v932_v32 }
 0x30d   : > { %v968_v36 = vadd.f32 %v965_v22, %v954_v31 }
 0x30e   : > { %v967_v37 = vadd.f32 %v960_v20, %v953_v34 }
 0x30f   : > { %v970_v39 = vmax.f32 %v968_v36, 0.0 }
 0x310   : > { %v969_v42 = vmax.f32 %v967_v37, 0.0 }
 0x311   : > { %972 = vst.msk [vmem:[#allocation3 + $0x8] sm:$0xff] %vm797_vm11, %v970_v39 }
 0x312   : > { %971 = vst.msk [vmem:[#allocation3] sm:$0xff] %vm797_vm11, %v969_v42  ;;  %v3039_v48 = vpack.c.bf16 %v970_v39, %v969_v42 }
 0x314   : > { %3040 = vmatprep.subr.bf16.mxu1 %v3039_v48 }
 0x315   : > { %3042 = vmatpush3.bf16.msra.mxu1 %v3039_v48 }
 0x318   : > { %v1382_v28 = vpop.permute.xlu1 %1381  ;;  %v1377_v29 = vpop.permute.xlu0 %1376  ;;  %2900 = vmatmul.mubr.msk.f32.vlgmr.msra.gmra.mrb[0].mxu1 %vm813_vm13, %v974_v56 }
 0x319   : > { %2913 = vmatprep.mubr.msk.f32.mxu1 %vm813_vm13, %v2714_v60 }
 0x31c   : > { %v1397_v33 = vpop.permute.xlu1 %1396  ;;  %v1392_v35 = vpop.permute.xlu0 %1391 }
 0x320   : > { %v1599_v45 = vpop.permute.xlu1 %1598  ;;  %v1594_v49 = vpop.permute.xlu0 %1593 }
 0x324   : > { %v1614_v0 = vpop.permute.xlu1 %1613  ;;  %v1609_v8 = vpop.permute.xlu0 %1608 }
 0x382   : > { %v2908_v38 = vpop.f32.mrb[2].mxu0 }
 0x383   : > { %v1168_v40 = vmul.f32 %v2908_v38, %v1165_v24  ;;  %v1145_v41 = vpop.f32.mrb[3].mxu0 }
 0x384   : > { %v1167_v43 = vmul.f32 %v1160_v25, %v1145_v41 }
 0x385   : > { %v1183_v44 = vadd.f32 %v1180_v26, %v1168_v40 }
 0x386   : > { %v1182_v46 = vadd.f32 %v1175_v27, %v1167_v43  ;;  %v2922_v47 = vpop.f32.mrb[4].mxu0 }
 0x387   : > { %v1185_v50 = vmax.f32 %v1183_v44, 0.0  ;;  %v1385_v51 = vmul.f32 %v2922_v47, %v1382_v28  ;;  %v1362_v52 = vpop.f32.mrb[5].mxu0 }
 0x388   : > { %v1184_v53 = vmax.f32 %v1182_v46, 0.0  ;;  %v1384_v54 = vmul.f32 %v1377_v29, %v1362_v52 }
 0x389   : > { %1187 = vst.msk [vmem:[#allocation3 + $0x18] sm:$0xff] %vm813_vm13, %v1185_v50  ;;  %v1400_v55 = vadd.f32 %v1397_v33, %v1385_v51 }
 0x38a   : > { %1186 = vst.msk [vmem:[#allocation3 + $0x10] sm:$0xff] %vm813_vm13, %v1184_v53  ;;  %v1399_v57 = vadd.f32 %v1392_v35, %v1384_v54  ;;  %v2936_v58 = vpop.f32.mrb[6].mxu0  ;;  %v3047_v59 = vpack.c.bf16 %v1185_v50, %v1184_v53 }
 0x38b   : > { %v1402_v61 = vmax.f32 %v1400_v55, 0.0  ;;  %v1602_v62 = vmul.f32 %v2936_v58, %v1599_v45  ;;  %v1579_v63 = vpop.f32.mrb[7].mxu0 }
 0x38c   : > { %v1401_v6 = vmax.f32 %v1399_v57, 0.0  ;;  %v1601_v7 = vmul.f32 %v1594_v49, %v1579_v63  ;;  %3048 = vmatprep.subr.bf16.mxu1 %v3047_v59 }
 0x38d   : > { %1404 = vst.msk [vmem:[#allocation3 + $0x28] sm:$0xff] %vm827_vm12, %v1402_v61  ;;  %v1617_v9 = vadd.f32 %v1614_v0, %v1602_v62  ;;  %3050 = vmatpush3.bf16.msra.mxu1 %v3047_v59 }
 0x38e   : > { %1403 = vst.msk [vmem:[#allocation3 + $0x20] sm:$0xff] %vm827_vm12, %v1401_v6  ;;  %v1616_v11 = vadd.f32 %v1609_v8, %v1601_v7  ;;  %v3055_v12 = vpack.c.bf16 %v1402_v61, %v1401_v6 }
 0x38f   : > { %v1619_v14 = vmax.f32 %v1617_v9, 0.0 }
 0x390   : > { %v1618_v15 = vmax.f32 %v1616_v11, 0.0  ;;  %2914 = vmatmul.mubr.msk.f32.vlgmr.msra.gmra.mrb[2].mxu1 %vm813_vm13, %v2715_v10  ;;  %3056 = vmatprep.subr.bf16.mxu1 %v3055_v12 }
 0x391   : > { %1621 = vst.msk [vmem:[#allocation3 + $0x38] sm:$0xff] %vm827_vm12, %v1619_v14  ;;  %3058 = vmatpush3.bf16.msra.mxu1 %v3055_v12  ;;  %2927 = vmatprep.mubr.msk.f32.mxu1 %vm813_vm13, %v2728_v13 }
 0x392   : > { %1620 = vst.msk [vmem:[#allocation3 + $0x30] sm:$0xff] %vm827_vm12, %v1618_v15  ;;  %v3063_v17 = vpack.c.bf16 %v1619_v14, %v1618_v15 }
 0x394   : > { %2928 = vmatmul.mubr.msk.f32.vlgmr.msra.gmra.mrb[4].mxu1 %vm813_vm13, %v2729_v16  ;;  %3064 = vmatprep.subr.bf16.mxu1 %v3063_v17 }
 0x395   : > { %3066 = vmatpush3.bf16.msra.mxu1 %v3063_v17  ;;  %2941 = vmatprep.mubr.msk.f32.mxu1 %vm813_vm13, %v2742_v18 }
 0x398   : > { %2942 = vmatmul.mubr.msk.f32.vlgmr.msra.gmra.mrb[6].mxu1 %vm813_vm13, %v2743_v19 }
 0x3eb   : > { %v2901_v20 = vpop.f32.mrb[0].mxu1 }
 0x3ec   : > { %1057 = vst.msk [vmem:[#allocation4 + $0x8] sm:$0xff] %vm797_vm11, %v2901_v20  ;;  %v1047_v21 = vpop.f32.mrb[1].mxu1 }
 0x3ed   : > { %1056 = vst.msk [vmem:[#allocation4] sm:$0xff] %vm797_vm11, %v1047_v21 }
 0x463   : > { %v2915_v22 = vpop.f32.mrb[2].mxu1 }
 0x464   : > { %1274 = vst.msk [vmem:[#allocation4 + $0x18] sm:$0xff] %vm813_vm13, %v2915_v22  ;;  %v1263_v23 = vpop.f32.mrb[3].mxu1 }
 0x465   : > { %1273 = vst.msk [vmem:[#allocation4 + $0x10] sm:$0xff] %vm813_vm13, %v1263_v23 }
 0x467   : > { %v2929_v24 = vpop.f32.mrb[4].mxu1 }
 0x468   : > { %1491 = vst.msk [vmem:[#allocation4 + $0x28] sm:$0xff] %vm827_vm12, %v2929_v24  ;;  %v1480_v25 = vpop.f32.mrb[5].mxu1 }
 0x469   : > { %1490 = vst.msk [vmem:[#allocation4 + $0x20] sm:$0xff] %vm827_vm12, %v1480_v25 }
 0x46b   : > { %v2943_v26 = vpop.f32.mrb[6].mxu1 }
 0x46c   : > { %1708 = vst.msk [vmem:[#allocation4 + $0x38] sm:$0xff] %vm827_vm12, %v2943_v26  ;;  %v1697_v27 = vpop.f32.mrb[7].mxu1 }
 0x46d   : > { %1707 = vst.msk [vmem:[#allocation4 + $0x30] sm:$0xff] %vm827_vm12, %v1697_v27 }
 0x46e PF: > { %p2746_p0 = scmp.ne.s32.totalorder %s3395_s15, 1 }
 0x46f   : > { %v1721_v30 = vld [vmem:[#allocation4 + $0x10] sm:$0xff] (!%p2746_p0)  ;;  %vm1725_vm14 = vcmask (!%p2746_p0), 130048   ;;  %v3428_v37 = vmov (!%p2746_p0), 0   ;;  %vm1893_vm15 = vcmask (!%p2746_p0), 64512   ;;  %v1722_v40 = vld [vmem:[#allocation4 + $0x18] sm:$0xff] (!%p2746_p0)  ;;  %v1891_v41 = vld [vmem:[#allocation4 + $0x28] sm:$0xff] (!%p2746_p0) }
 0x470   : > { %1712 = sbr.rel (%p2746_p0) target bundleno = 1639 (0x667), region = 92  ;;  %2948 = vmatprep.mubr.msk.f32.mxu0 (!%p2746_p0), %vm1725_vm14, %v1721_v30  ;;  %v1715_v32 = vld [vmem:[#allocation5] sm:$0xff] (!%p2746_p0)  ;;  %v1716_v33 = vld [vmem:[#allocation5 + $0x8] sm:$0xff] (!%p2746_p0)  ;;  %3241 = vset.pattern.permute.xlu0 (!%p2746_p0), %v3428_v37  ;;  %vm1807_vm0 = vcmask (!%p2746_p0), 326656   ;;  %s4130_s22 = sld [smem:[#allocation27_spill]] (!%p2746_p0)  ;;  %v3429_v53 = vmov (!%p2746_p0), 0.0|0.0  }
 0x471   : > { %v3905_v34 = vpack.c.bf16 (!%p2746_p0), %v1716_v33, %v1715_v32  ;;  %v1717_v35 = vld [vmem:[#allocation5 + $0x10] sm:$0xff] (!%p2746_p0)  ;;  %v1718_v36 = vld [vmem:[#allocation5 + $0x18] sm:$0xff] (!%p2746_p0)  ;;  %3242 = vset.pattern.permute.xlu1 (!%p2746_p0), %v3428_v37  ;;  %v1890_v39 = vld [vmem:[#allocation4 + $0x20] sm:$0xff] (!%p2746_p0)  ;;  %s4131_s2 = sld [smem:[#allocation28_spill]] (!%p2746_p0)  ;;  %vm3430_vm1 = vmmov (!%p2746_p0), 0   ;;  %v3431_v54 = vmov (!%p2746_p0), 0.0  }
 0x472   : > { %v1723_v28 = vld [vmem:[#allocation5 + $0x28] sm:$0xff] (!%p2746_p0)  ;;  %v3913_v42 = vpack.c.bf16 (!%p2746_p0), %v1718_v36, %v1717_v35  ;;  %v1713_v43 = vld [vmem:[#allocation4] sm:$0xff] (!%p2746_p0)  ;;  %2966 = vmatprep.mubr.msk.f32.mxu1 (!%p2746_p0), %vm1893_vm15, %v1890_v39  ;;  %s4132_s1 = sld [smem:[#allocation29_spill]] (!%p2746_p0)  ;;  %v2271_v22 = vld [vmem:[#allocation3 + $0x10] sm:$0xff] (!%p2746_p0)  ;;  %s2757_s9 = sshll.u32 (!%p2746_p0), %s3391_s14, 4 }
 0x473   : > { %v1724_v29 = vld [vmem:[#allocation5 + $0x30] sm:$0xff] (!%p2746_p0)  ;;  %v3908_v38 = vld [vmem:[#allocation5 + $0x38] sm:$0xff] (!%p2746_p0)  ;;  %v1719_v47 = vld [vmem:[#allocation5 + $0x20] sm:$0xff] (!%p2746_p0)  ;;  %s2176_s12 = scalar_lea.vmem (!%p2746_p0), [#allocation2], %s2757_s9 }
 0x474   : > { %v3902_v31 = vpack.c.bf16 (!%p2746_p0), %v1724_v29, %v1723_v28  ;;  %2964 = vmatprep.subr.mxu1 (!%p2746_p0), %v3908_v38  ;;  %v1714_v49 = vld [vmem:[#allocation4 + $0x8] sm:$0xff] (!%p2746_p0)  ;;  %v1980_v50 = vld [vmem:[#allocation5 + $0x40] sm:$0xff] (!%p2746_p0)  ;;  %v1978_v51 = vld [vmem:[#allocation4 + $0x30] sm:$0xff] (!%p2746_p0) }
 0x475   : > { %2965 = vmatpush3.msra.mxu1 (!%p2746_p0), %v3908_v38  ;;  %v1979_v52 = vld [vmem:[#allocation4 + $0x38] sm:$0xff] (!%p2746_p0)  ;;  %v2455_v55 = vld [vmem:[#allocation3 + $0x30] sm:$0xff] (!%p2746_p0)  ;;  %v2179_v20 = vld [vmem:[#allocation3] sm:$0xff] (!%p2746_p0) }
 0x476   : > { %3068 = vmatprep.subr.bf16.mxu0 (!%p2746_p0), %v3902_v31  ;;  %v2064_v44 = vld [vmem:[%s4130_s22] sm:$0xff] (!%p2746_p0)  ;;  %2967 = vmatmul.mubr.msk.f32.vlgmr.msra.gmra.mrb[0].mxu1 (!%p2746_p0), %vm1893_vm15, %v1891_v41  ;;  %v2065_v46 = vld [vmem:[%s4130_s22 + $0x8] sm:$0xff] (!%p2746_p0)  ;;  %v2180_v21 = vld [vmem:[#allocation3 + $0x8] sm:$0xff] (!%p2746_p0) }
 0x477   : > { %3070 = vmatpush3.bf16.msra.mxu0 %v3902_v31  ;;  %2068 = vperm.xlu0 %3241, %v2064_v44   ;;  %v2078_v45 = vld [vmem:[%s4131_s2] sm:$0xff]  ;;  %v2079_v48 = vld [vmem:[%s4131_s2 + $0x8] sm:$0xff]  ;;  %v2363_v24 = vld [vmem:[#allocation3 + $0x20] sm:$0xff] }
 0x478   : > { %3072 = vmatprep.subr.bf16.mxu0 %v3905_v34  ;;  %2082 = vperm.xlu1 %3242, %v2078_v45   ;;  %v2456_v56 = vld [vmem:[#allocation3 + $0x38] sm:$0xff]  ;;  %v2094_v19 = vld [vmem:[%s4132_s1] sm:$0xf]  ;;  %v2364_v25 = vld [vmem:[#allocation3 + $0x28] sm:$0xff] }
 0x479   : > { %3079 = vmatprep.subr.bf16.mxu1 %v3429_v53  ;;  %2978 = vmatprep.mubr.msk.f32.mxu1 %vm3430_vm1, %v3431_v54  ;;  %v2272_v23 = vld [vmem:[#allocation3 + $0x18] sm:$0xff] }
 0x47a   : > { %2949 = vmatmul.mubr.msk.f32.vlgmr.msra.gmra.mrb[0].mxu0 %vm1725_vm14, %v1722_v40  ;;  %v2178_v45 = vld [vmem:[%s2176_s12 + $0x8] sm:$0xff] }
 0x47b   : > { %3074 = vmatpush3.bf16.msra.mxu0 %v3905_v34  ;;  %2961 = vmatprep.mubr.msk.f32.mxu0 %vm1807_vm0, %v1713_v43 }
 0x47c   : > { %3076 = vmatprep.subr.bf16.mxu0 %v3913_v42  ;;  %2073 = vperm.xlu0 %3241, %v2065_v46   ;;  %v2177_v46 = vld [vmem:[%s2176_s12] sm:$0xff] }
 0x47d   : > { %2087 = vperm.xlu1 %3242, %v2079_v48  }
 0x47f   : > { %3078 = vmatpush3.bf16.msra.mxu0 %v3913_v42 }
 0x480   : > { %2959 = vmatprep.subr.mxu0 %v1719_v47 }
 0x483   : > { %2960 = vmatpush3.msra.mxu0 %v1719_v47 }
 0x484   : > { %2962 = vmatmul.mubr.msk.f32.vlgmr.msra.gmra.mrb[0].mxu0 %vm1807_vm0, %v1714_v49  ;;  %2969 = vmatprep.subr.mxu0 %v1980_v50 }
 0x485   : > { %2970 = vmatpush3.msra.mxu0 %v1980_v50  ;;  %2971 = vmatprep.mubr.msk.f32.mxu0 %vm1893_vm15, %v1978_v51 }
 0x486   : > { %3006 = vmatprep.subr.mxu0 %v1980_v50 }
 0x488   : > { %2972 = vmatmul.mubr.msk.f32.vlgmr.msra.gmra.mrb[2].mxu0 %vm1893_vm15, %v1979_v52 }
 0x489   : > { %3007 = vmatpush3.msra.mxu0 %v1980_v50  ;;  %3008 = vmatprep.mubr.msk.f32.mxu0 %vm1893_vm15, %v2455_v55 }
 0x48c   : > { %3009 = vmatmul.mubr.msk.f32.vlgmr.msra.gmra.mrb[4].mxu0 %vm1893_vm15, %v2456_v56 }
 0x4f6   : > { %v2069_v59 = vpop.permute.xlu0 %2068 }
 0x4f7   : > { %v2083_v63 = vpop.permute.xlu1 %2082 }
 0x4fb   : > { %v2074_v9 = vpop.permute.xlu0 %2073 }
 0x4fc   : > { %v2088_v12 = vpop.permute.xlu1 %2087 }
 0x549   : > { %v2968_v57 = vpop.f32.mrb[0].mxu1 }
 0x54a   : > { %v1966_v58 = vpop.f32.mrb[1].mxu1 }
 0x557   : > { %v2963_v60 = vpop.f32.mrb[0].mxu0 }
 0x558   : > { %v3094_v61 = vadd.f32 %v2968_v57, %v2963_v60  ;;  %v1880_v62 = vpop.f32.mrb[1].mxu0 }
 0x559   : > { %v3096_v0 = vadd.f32 %v1966_v58, %v1880_v62 }
 0x55b   : > { %v2973_v6 = vpop.f32.mrb[2].mxu0 }
 0x55c   : > { %v3095_v7 = vadd.f32 %v3094_v61, %v2973_v6  ;;  %v2053_v8 = vpop.f32.mrb[3].mxu0 }
 0x55d   : > { %v3097_v10 = vadd.f32 %v3096_v0, %v2053_v8 }
 0x55e   : > { %v2077_v11 = vmul.f32 %v3095_v7, %v2074_v9 }
 0x55f   : > { %v2076_v13 = vmul.f32 %v3097_v10, %v2069_v59  ;;  %v3010_v26 = vpop.f32.mrb[4].mxu0 }
 0x560   : > { %v2091_v14 = vadd.f32 %v2088_v12, %v2077_v11  ;;  %v2529_v27 = vpop.f32.mrb[5].mxu0 }
 0x561   : > { %v2090_v15 = vadd.f32 %v2083_v63, %v2076_v13 }
 0x562   : > { %v2093_v16 = vmax.f32 %v2091_v14, 0.0 }
 0x563   : > { %v2092_v17 = vmax.f32 %v2090_v15, 0.0 }
 0x565   : > { %v3080_v18 = vpack.c.bf16 %v2093_v16, %v2092_v17 }
 0x567   : > { %3081 = vmatpush3.bf16.msra.mxu1 %v3080_v18 }
 0x568   : > { %3083 = vmatprep.subr.bf16.mxu1 %v3905_v34 }
 0x56a   : > { %2979 = vmatmul.mubr.msk.f32.vlgmr.msra.gmra.mrb[2].mxu1 %vm1725_vm14, %v2094_v19 }
 0x56b   : > { %3085 = vmatpush3.bf16.msra.mxu1 %v3905_v34  ;;  %2991 = vmatprep.mubr.msk.f32.mxu1 %vm1807_vm0, %v2179_v20 }
 0x56c   : > { %3087 = vmatprep.subr.bf16.mxu1 %v3913_v42 }
 0x56f   : > { %3089 = vmatpush3.bf16.msra.mxu1 %v3913_v42 }
 0x570   : > { %2989 = vmatprep.subr.mxu1 %v1719_v47 }
 0x573   : > { %2990 = vmatpush3.msra.mxu1 %v1719_v47 }
 0x574   : > { %2992 = vmatmul.mubr.msk.f32.vlgmr.msra.gmra.mrb[4].mxu1 %vm1807_vm0, %v2180_v21  ;;  %3091 = vmatprep.subr.bf16.mxu1 %v3902_v31 }
 0x575   : > { %3093 = vmatpush3.bf16.msra.mxu1 %v3902_v31  ;;  %2998 = vmatprep.mubr.msk.f32.mxu1 %vm1725_vm14, %v2271_v22 }
 0x576   : > { %3001 = vmatprep.subr.mxu1 %v3908_v38 }
 0x578   : > { %2999 = vmatmul.mubr.msk.f32.vlgmr.msra.gmra.mrb[6].mxu1 %vm1725_vm14, %v2272_v23 }
 0x579   : > { %3002 = vmatpush3.msra.mxu1 %v3908_v38  ;;  %3003 = vmatprep.mubr.msk.f32.mxu1 %vm1893_vm15, %v2363_v24 }
 0x57c   : > { %3004 = vmatmul.mubr.msk.f32.vlgmr.msra.gmra.mrb[8].mxu1 %vm1893_vm15, %v2364_v25 }
 0x63d   : > { %v2164_v28 = vpop.f32.mrb[2].mxu1 }
 0x63e   : > { %v2756_v29 = vmul.f32 -1.442695, %v2164_v28  ;;  %v2980_v30 = vpop.f32.mrb[3].mxu1 }
 0x640   : > { %3243 = vpow2.f32 %v2756_v29 }
 0x647   : > { %v2993_v31 = vpop.f32.mrb[4].mxu1 }
 0x648   : > { %v2253_v32 = vpop.f32.mrb[5].mxu1 }
 0x64a   : > { %v3244_v33 = vpop.eup %3243 }
 0x64b   : > { %v2171_v34 = vadd.f32 1.0, %v3244_v33  ;;  %v3000_v35 = vpop.f32.mrb[6].mxu1 }
 0x64c   : > { %v2345_v36 = vpop.f32.mrb[7].mxu1 }
 0x64d   : > { %3245 = vrcp.f32 %v2171_v34 }
 0x64f   : > { %v3005_v37 = vpop.f32.mrb[8].mxu1 }
 0x650   : > { %v2437_v38 = vpop.f32.mrb[9].mxu1 }
 0x657   : > { %v3246_v39 = vpop.eup %3245 }
 0x658   : > { %v2174_v40 = vadd.f32 1.0, %v3246_v39 }
 0x65a   : > { %v2265_v41 = vrot.slane %v2174_v40, %v520_v2  ;;  %v2357_v42 = vrot.slane %v2174_v40, %v544_v3  ;;  %v2449_v43 = vrot.slane %v2174_v40, %v556_v4  ;;  %v2541_v44 = vrot.slane %v2174_v40, %v564_v5 }
 0x65c   : > { %v2267_v47 = vmul.f32 %v2993_v31, %v2265_v41  ;;  %v2266_v48 = vmul.f32 %v2265_v41, %v2253_v32  ;;  %v2359_v49 = vmul.f32 %v3000_v35, %v2357_v42  ;;  %v2358_v50 = vmul.f32 %v2357_v42, %v2345_v36 }
 0x65d   : > { %v2451_v51 = vmul.f32 %v3005_v37, %v2449_v43  ;;  %v2543_v2 = vmul.f32 %v3010_v26, %v2541_v44  ;;  %v2450_v52 = vmul.f32 %v2449_v43, %v2437_v38  ;;  %v2542_v53 = vmul.f32 %v2541_v44, %v2529_v27 }
 0x65e   : > { %v2269_v3 = vadd.f32 %v2267_v47, %v2178_v45  ;;  %v2268_v54 = vadd.f32 %v2266_v48, %v2177_v46 }
 0x660   : > { %v2361_v55 = vadd.f32 %v2359_v49, %v2269_v3  ;;  %v2360_v4 = vadd.f32 %v2358_v50, %v2268_v54 }
 0x662   : > { %v2453_v56 = vadd.f32 %v2451_v51, %v2361_v55  ;;  %v2452_v1 = vadd.f32 %v2450_v52, %v2360_v4 }
 0x664   : > { %v2545_v5 = vadd.f32 %v2543_v2, %v2453_v56  ;;  %v2544_v57 = vadd.f32 %v2542_v53, %v2452_v1 }
 0x666   : > { %2547 = vst [vmem:[%s3723_s7 + $0x8] sm:$0xff] %v2545_v5  ;;  %2546 = vst [vmem:[%s3723_s7] sm:$0xff] %v2544_v57 }
 0x667 PF: > { %s4133_s6 = sld [smem:[#allocation12_spill]]  ;;  %s2556_s3 = smul.u32 %s3391_s14, %s3395_s15 }
 0x668   : > { %s2564_s28 = sshll.u32 %s3723_s7, 4  ;;  %s4134_s2 = sld [smem:[#allocation30_spill]]  ;;  %s3973_s28 = int_to_ptr.vmem [resolvable:$true] %s2564_s28 }
 0x669   : > { %s4135_s8 = sand.u32 1, %s3371_s26   ;;  %s3277_s11 = scalar_lea.vmem %s3973_s28, 256 }
 0x66a   : > { %s3982_s10 = scalar_lea.sflag [#allocation8], %s4135_s8  ;;  %p3278_p2 = scmp.ne.s32.totalorder %s3973_s28, %s3277_s11 }
 0x66b   : > { %p4136_p5 = scmp.ne.s32.totalorder %s4115_s13, 0  ;;  %s3432_s14 = smov [#allocation9]  }
 0x66c   : > { %s3281_s15 = sshll.u32 %s3432_s14, 4  ;;  %s3282_s15 = int_to_ptr.vmem [resolvable:$false] %s3281_s15 }
 0x66d   : > { %s3101_s16 = smul.u32 10, %s4133_s6  ;;  %p3279_p7 = pnand %p3278_p2, %p4136_p5 }
 0x66e   : > { %s3283_s7 = scalar_lea.vmem %s3282_s15, 512  ;;  %p3284_p11 = scmp.lt.s32.totalorder %s3973_s28, %s3282_s15 }
 0x66f   : > { %s2561_s1 = sadd.s32 %s3101_s16, %s2556_s3  ;;  %p3280_p10 = pneg %p3279_p7 }
 0x670   : > { %s2767_s9 = sshll.u32 %s2561_s1, 7  ;;  %p3285_p12 = scmp.lt.s32.totalorder %s3283_s7, %s3277_s11 }
 0x671   : > { %s3978_s4 = scalar_lea.hbm %s4134_s2, %s2767_s9 }
 0x672   : > { %p3286_p6 = por %p3285_p12, %p3284_p11 }
 0x674   : > { %p3287_p9 = pnand %p3286_p6, %p3280_p10 }
 0x676   : > { %3290 = shalt.err (!%p3287_p9)
}
 0x677   : > { %s3291_s0 = scalar_lea.hbm %s3978_s4, 256  ;;  %s3295_s3 = scalar_lea.hbm %s4134_s2, 2560 }
 0x678   : > { %p3292_p13 = scmp.ne.s32.totalorder %s3978_s4, %s3291_s0  ;;  %p3296_p3 = scmp.lt.u32.totalorder %s3978_s4, %s4134_s2 }
 0x679   : > { %p3297_p4 = scmp.lt.u32.totalorder %s3295_s3, %s3291_s0  ;;  %p3299_p2 = scmp.lt.u32.totalorder %s3291_s0, %s3978_s4 }
 0x67a   : > { %p3293_p1 = pnand %p3292_p13, %p4136_p5 }
 0x67b   : > { %p3298_p0 = por %p3297_p4, %p3296_p3 }
 0x67c   : > { %p3294_p8 = pneg %p3293_p1 }
 0x67d   : > { %p3300_p7 = por %p3299_p2, %p3298_p0 }
 0x67f   : > { %p3301_p10 = pnand %p3300_p7, %p3294_p8 }
 0x681   : > { %3304 = shalt.err (!%p3301_p10)
}
 0x682   : > { %s3433_s11 = smov 128   ;;  %s3434_s9 = smov 640  }
 0x683   : > { %s3435_s12 = smov 8  }
 0x684   : > { %3104 = dma.vmem_to_hbm [thread:$0]  (%p4136_p5), %s3973_s28, 256, %s3978_s4, %s3982_s10, %s3433_s11, %s3434_s9, %s3435_s12  }
 0x685 PF: > { %p3115_p11 = scmp.ge.s32.totalorder %s3415_s20, 2  ;;  %s2579_s14 = sand.u32 1, %s3367_s25  }
 0x686   : > { %p4137_p12 = scmp.ne.s32.totalorder %s4116_s5, 0  ;;  %s2580_s15 = scalar_lea.sflag [#allocation8], %s2579_s14 }
 0x688   : > { %p3111_p6 = pnand %p3115_p11, %p4137_p12 }
 0x68a   : > { %3362 = dma.done.wait (!%p3111_p6), %s2580_s15, 256  }
 0x68b   : > { %3364 = vsyncadd (!%p3111_p6), %s2580_s15, 4294967040  ;;  %s29_s20 = sadd.s32 1, %s3415_s20   ;;  %s4139_s14 = sld [smem:[#allocation13_spill]] }
 0x68c   : > { %p4011_p9 = scmp.ge.s32.totalorder %s29_s20, 22   ;;  %s4140_s15 = sld [smem:[#allocation14_spill]] }
 0x68d   : > { %s4141_s13 = sld [smem:[#allocation15_spill]]  ;;  %s4142_s5 = sld [smem:[#allocation16_spill]] }
 0x68e   : > { %s4143_s25 = smov %s3371_s26  ;;  %s4144_s26 = smov %s3375_s27 }
 0x68f   : > { %s4145_s27 = smov %s3620_s17  ;;  %s4146_s28 = smov %s3383_s29 }
 0x690   : > { %s4147_s29 = smov %s3387_s30  ;;  %s4148_s30 = smov %s3617_s18 }
 0x691   : > { %s4149_s16 = smov %s3411_s19  ;;  %s4150_s17 = smov %s4154_s23 }
 0x692   :  { %28 = sbr.rel (!%p4011_p9) target bundleno = 25 (0x19), region = 165 }
 0x693   : > { %s4151_s18 = smov %s4141_s13  ;;  %s4152_s19 = smov %s4142_s5 }
 0x699   :  { %2585 = vsyncpa [#allocation7], 1 }
 0x69a   :  { %2587 = vsyncpa [#allocation7 + $0x1], 1 }
 0x69b   :  { %2588 = vsyncpa [#allocation8], 1 }
 0x69c   :  { %2590 = vsyncpa [#allocation8 + $0x1], 1 }

</bundles_post_ra>
